<compile_context>
chip_gen: v7x
topology: tpu7x:2x2x1
jax: 0.10.0
libtpu: 0.0.40
codegen_flags: <defaults>
</compile_context>

<pallas_src>
import jax
import jax.numpy as jnp
from jax.experimental import pallas as pl
from jax.experimental.pallas import tpu as pltpu

HIDDEN = 64       # forward() hardcodes hidden size 64
NUM_LAYERS = 2    # forward() hardcodes 2 layers


def rnn_predictor_kernel(x_flat_ref, x_num_ref,
                         w_ih0_ref, w_hh0_ref, b0_ref,
                         w_cat1_ref, b1_ref,
                         w_ts_ref, b_ts_ref,
                         w_num_ref, b_num_ref,
                         w_comb_ref, b_comb_ref,
                         out_ref):
    H = HIDDEN
    Bp = x_num_ref.shape[0]                 # padded batch (multiple of 8)
    T = x_flat_ref.shape[0] // Bp           # static timesteps

    # ---- Hoisted layer-0 input projection: one big matmul + bias, outside the loop.
    proj0 = (jnp.dot(x_flat_ref[...], w_ih0_ref[...],
                     preferred_element_type=jnp.float32)
             + b0_ref[...])                                  # (T*Bp, 4H)

    w_hh0 = w_hh0_ref[...]                                   # (H, 4H)
    w_cat1 = w_cat1_ref[...]                                 # (2H, 4H)
    # Hoist the bias broadcast out of the loop (JAX does not CSE broadcast_in_dim).
    b1 = jnp.broadcast_to(b1_ref[...], (Bp, 4 * H))

    def cell(gates, c):
        # Gate column order (reordered in the wrapper): i | f | o | g
        sig = jax.nn.sigmoid(gates[:, :3 * H])               # one 192-wide sigmoid
        g = jnp.tanh(gates[:, 3 * H:])                       # one 64-wide tanh
        i = sig[:, 0 * H:1 * H]
        f = sig[:, 1 * H:2 * H]
        o = sig[:, 2 * H:3 * H]
        c_new = f * c + i * g
        h_new = o * jnp.tanh(c_new)
        return h_new, c_new

    zeros = jnp.zeros((Bp, H), jnp.float32)
    h0, c0, h1, c1 = zeros, zeros, zeros, zeros

    # T is small and static: fully unroll the recurrence.
    for t in range(T):
        # Layer 0: hoisted input projection slice + single recurrent matmul.
        gates0 = proj0[t * Bp:(t + 1) * Bp, :] + jnp.dot(
            h0, w_hh0, preferred_element_type=jnp.float32)
        h0, c0 = cell(gates0, c0)
        # Layer 1: fused [input | recurrent] matmul — one (Bp,128)x(128,256) dot.
        gates1 = jnp.dot(jnp.concatenate([h0, h1], axis=-1), w_cat1,
                         preferred_element_type=jnp.float32) + b1
        h1, c1 = cell(gates1, c1)

    # fc_ts on the last-timestep output of the top LSTM layer
    out_ts = jnp.dot(h1, w_ts_ref[...],
                     preferred_element_type=jnp.float32) + b_ts_ref[...]
    # fc_num on X_num
    out_num = jnp.dot(x_num_ref[...], w_num_ref[...],
                      preferred_element_type=jnp.float32) + b_num_ref[...]

    # fc_combined(cat([out_ts, out_num], dim=1)): split the (pre-transposed) weight
    # along its input axis instead of concatenating — identical arithmetic.
    O = out_ts.shape[1]
    w_comb = w_comb_ref[...]                                 # (2O, O)
    out = (jnp.dot(out_ts, w_comb[:O, :], preferred_element_type=jnp.float32)
           + jnp.dot(out_num, w_comb[O:, :], preferred_element_type=jnp.float32)
           + b_comb_ref[...])
    out_ref[...] = out.astype(out_ref.dtype)


def rnn_predictor_forward(X_num, X_ts, p):
    B, T, D_ts = X_ts.shape
    H = HIDDEN
    O = p["w_comb"].shape[0]
    Bp = ((B + 7) // 8) * 8                  # pad batch to a multiple of 8 sublanes

    # Time-major, batch-padded, flattened to (T*Bp, D_ts) so the layer-0 input
    # projection is a single matmul inside the kernel.
    x_tm = jnp.transpose(X_ts, (1, 0, 2)).astype(jnp.float32)       # (T, B, D_ts)
    x_tm = jnp.pad(x_tm, ((0, 0), (0, Bp - B), (0, 0)))
    x_flat = x_tm.reshape(T * Bp, D_ts)
    x_num_p = jnp.pad(X_num.astype(jnp.float32), ((0, Bp - B), (0, 0)))

    def reorder_rows(w):   # PyTorch gate rows i|f|g|o  ->  i|f|o|g
        return jnp.concatenate([w[:2 * H], w[3 * H:], w[2 * H:3 * H]], axis=0)

    def reorder_cols(b):   # same reorder for the (1, 4H) bias
        return jnp.concatenate([b[:, :2 * H], b[:, 3 * H:], b[:, 2 * H:3 * H]],
                               axis=1)

    # Pre-transposed (in, out) weights; layer-1 ih/hh fused into one (2H, 4H).
    w_ih0_t = reorder_rows(p["w_ih0"]).T                    # (D_ts, 4H)
    w_hh0_t = reorder_rows(p["w_hh0"]).T                    # (H, 4H)
    b0_r = reorder_cols(p["b0"])                            # (1, 4H)
    w_cat1_t = jnp.concatenate(
        [reorder_rows(p["w_ih1"]), reorder_rows(p["w_hh1"])], axis=1).T  # (2H, 4H)
    b1_r = reorder_cols(p["b1"])                            # (1, 4H)
    w_ts_t = p["w_ts"].T                                    # (H, O)
    w_num_t = p["w_num"].T                                  # (D_num, O)
    w_comb_t = p["w_comb"].T                                # (2O, O)

    args = [x_flat, x_num_p,
            w_ih0_t, w_hh0_t, b0_r,
            w_cat1_t, b1_r,
            w_ts_t, p["b_ts"],
            w_num_t, p["b_num"],
            w_comb_t, p["b_comb"]]

    out = pl.pallas_call(
        rnn_predictor_kernel,
        out_shape=jax.ShapeDtypeStruct((Bp, O), jnp.float32),
        in_specs=[pl.BlockSpec(memory_space=pltpu.MemorySpace.VMEM)
                  for _ in args],
        out_specs=pl.BlockSpec(memory_space=pltpu.MemorySpace.VMEM),
    )(*args)
    return out[:B]


def init_params(key, input_dim, input_dim2, output_dim):
    H = HIDDEN
    ks = jax.random.split(key, 14)

    def u(k, shape, fan_in):
        bound = 1.0 / jnp.sqrt(jnp.float32(fan_in))
        return jax.random.uniform(k, shape, jnp.float32, -bound, bound)

    # LSTM layer 0 / 1 (PyTorch: weight_ih (4H,in), weight_hh (4H,H), two biases (4H,))
    w_ih0 = u(ks[0], (4 * H, input_dim), H)
    w_hh0 = u(ks[1], (4 * H, H), H)
    b0 = (u(ks[2], (4 * H,), H) + u(ks[3], (4 * H,), H)).reshape(1, 4 * H)
    w_ih1 = u(ks[4], (4 * H, H), H)
    w_hh1 = u(ks[5], (4 * H, H), H)
    b1 = (u(ks[6], (4 * H,), H) + u(ks[7], (4 * H,), H)).reshape(1, 4 * H)
    # fc_ts, fc_num, fc_combined
    w_ts = u(ks[8], (output_dim, H), H)
    b_ts = u(ks[9], (output_dim,), H).reshape(1, output_dim)
    w_num = u(ks[10], (output_dim, input_dim2), input_dim2)
    b_num = u(ks[11], (output_dim,), input_dim2).reshape(1, output_dim)
    w_comb = u(ks[12], (output_dim, 2 * output_dim), 2 * output_dim)
    b_comb = u(ks[13], (output_dim,), 2 * output_dim).reshape(1, output_dim)

    return dict(w_ih0=w_ih0, w_hh0=w_hh0, b0=b0,
                w_ih1=w_ih1, w_hh1=w_hh1, b1=b1,
                w_ts=w_ts, b_ts=b_ts, w_num=w_num, b_num=b_num,
                w_comb=w_comb, b_comb=b_comb)


def reference_forward(X_num, X_ts, p):
    """Pure-JAX reference of the PyTorch forward (for correctness check)."""
    B, T, _ = X_ts.shape
    H = HIDDEN
    h0 = c0 = h1 = c1 = jnp.zeros((B, H), jnp.float32)

    def cell(x, h, c, wih, whh, b):
        g = x @ wih.T + h @ whh.T + b
        i = jax.nn.sigmoid(g[:, :H])
        f = jax.nn.sigmoid(g[:, H:2 * H])
        gg = jnp.tanh(g[:, 2 * H:3 * H])
        o = jax.nn.sigmoid(g[:, 3 * H:])
        c = f * c + i * gg
        return o * jnp.tanh(c), c

    for t in range(T):
        h0, c0 = cell(X_ts[:, t, :], h0, c0, p["w_ih0"], p["w_hh0"], p["b0"])
        h1, c1 = cell(h0, h1, c1, p["w_ih1"], p["w_hh1"], p["b1"])

    out_ts = h1 @ p["w_ts"].T + p["b_ts"]
    out_num = X_num @ p["w_num"].T + p["b_num"]
    comb = jnp.concatenate([out_ts, out_num], axis=1)
    return comb @ p["w_comb"].T + p["b_comb"]


if __name__ == "__main__":
    # small shapes consistent with the module's forward
    B, T = 4, 8
    input_dim, input_dim2, output_dim = 16, 8, 16

    key = jax.random.PRNGKey(0)
    k_num, k_ts, k_par = jax.random.split(key, 3)
    X_num = jax.random.normal(k_num, (B, input_dim2), jnp.float32)
    X_ts = jax.random.normal(k_ts, (B, T, input_dim), jnp.float32)
    params = init_params(k_par, input_dim, input_dim2, output_dim)

    out = rnn_predictor_forward(X_num, X_ts, params)
    out = jax.block_until_ready(out)

    ref = reference_forward(X_num, X_ts, params)
    assert out.shape == (B, output_dim)
    assert jnp.allclose(out, ref, rtol=1e-4, atol=1e-4), "mismatch vs reference"

    print("KERNEL_OK")
</pallas_src>

<mosaic_0001>
module attributes {stable_mosaic.version = 11 : i64} {
  func.func @rnn_predictor_kernel(%arg0: memref<64x16xf32, #tpu.memory_space<vmem>>, %arg1: memref<8x8xf32, #tpu.memory_space<vmem>>, %arg2: memref<16x256xf32, #tpu.memory_space<vmem>>, %arg3: memref<64x256xf32, #tpu.memory_space<vmem>>, %arg4: memref<1x256xf32, #tpu.memory_space<vmem>>, %arg5: memref<128x256xf32, #tpu.memory_space<vmem>>, %arg6: memref<1x256xf32, #tpu.memory_space<vmem>>, %arg7: memref<64x16xf32, #tpu.memory_space<vmem>>, %arg8: memref<1x16xf32, #tpu.memory_space<vmem>>, %arg9: memref<8x16xf32, #tpu.memory_space<vmem>>, %arg10: memref<1x16xf32, #tpu.memory_space<vmem>>, %arg11: memref<32x16xf32, #tpu.memory_space<vmem>>, %arg12: memref<1x16xf32, #tpu.memory_space<vmem>>, %arg13: memref<8x16xf32, #tpu.memory_space<vmem>>) attributes {dimension_semantics = [], scalar_prefetch = 0 : i64, scratch_operands = 0 : i64, tpu.core_type = #tpu.core_type<tc>} {
    %c0 = arith.constant 0 : index
    %c0_0 = arith.constant 0 : index
    %0 = vector.load %arg0[%c0, %c0_0] : memref<64x16xf32, #tpu.memory_space<vmem>>, vector<64x16xf32>
    %c0_1 = arith.constant 0 : index
    %c0_2 = arith.constant 0 : index
    %1 = vector.load %arg2[%c0_1, %c0_2] : memref<16x256xf32, #tpu.memory_space<vmem>>, vector<16x256xf32>
    %cst = arith.constant dense<0.000000e+00> : vector<64x256xf32>
    %2 = tpu.matmul %0, %1, %cst {dimension_numbers = #tpu.dot_dimension_numbers<[1], [0], [0], [1], [0, 0, 1, 1], [], []>} : vector<64x16xf32>, vector<16x256xf32>, vector<64x256xf32> -> vector<64x256xf32>
    %c0_3 = arith.constant 0 : index
    %c0_4 = arith.constant 0 : index
    %3 = vector.load %arg4[%c0_3, %c0_4] : memref<1x256xf32, #tpu.memory_space<vmem>>, vector<1x256xf32>
    %4 = vector.broadcast %3 : vector<1x256xf32> to vector<64x256xf32>
    %5 = arith.addf %2, %4 : vector<64x256xf32>
    %c0_5 = arith.constant 0 : index
    %c0_6 = arith.constant 0 : index
    %6 = vector.load %arg3[%c0_5, %c0_6] : memref<64x256xf32, #tpu.memory_space<vmem>>, vector<64x256xf32>
    %c0_7 = arith.constant 0 : index
    %c0_8 = arith.constant 0 : index
    %7 = vector.load %arg5[%c0_7, %c0_8] : memref<128x256xf32, #tpu.memory_space<vmem>>, vector<128x256xf32>
    %c0_9 = arith.constant 0 : index
    %c0_10 = arith.constant 0 : index
    %8 = vector.load %arg6[%c0_9, %c0_10] : memref<1x256xf32, #tpu.memory_space<vmem>>, vector<1x256xf32>
    %9 = vector.shape_cast %8 : vector<1x256xf32> to vector<1x256xf32>
    %10 = vector.broadcast %9 : vector<1x256xf32> to vector<8x256xf32>
    %cst_11 = arith.constant 0.000000e+00 : f32
    %11 = vector.broadcast %cst_11 : f32 to vector<8x64xf32>
    %12 = vector.extract_strided_slice %5 {offsets = [0, 0], sizes = [8, 256], strides = [1, 1]} : vector<64x256xf32> to vector<8x256xf32>
    %cst_12 = arith.constant dense<0.000000e+00> : vector<8x256xf32>
    %13 = tpu.matmul %11, %6, %cst_12 {dimension_numbers = #tpu.dot_dimension_numbers<[1], [0], [0], [1], [0, 0, 1, 1], [], []>} : vector<8x64xf32>, vector<64x256xf32>, vector<8x256xf32> -> vector<8x256xf32>
    %14 = arith.addf %12, %13 : vector<8x256xf32>
    %15 = vector.extract_strided_slice %14 {offsets = [0, 0], sizes = [8, 192], strides = [1, 1]} : vector<8x256xf32> to vector<8x192xf32>
    %16 = arith.negf %15 : vector<8x192xf32>
    %17 = math.exp %16 : vector<8x192xf32>
    %cst_13 = arith.constant 1.000000e+00 : f32
    %18 = vector.broadcast %cst_13 : f32 to vector<8x192xf32>
    %19 = arith.addf %18, %17 : vector<8x192xf32>
    %20 = arith.divf %18, %19 : vector<8x192xf32>
    %21 = vector.extract_strided_slice %14 {offsets = [0, 192], sizes = [8, 64], strides = [1, 1]} : vector<8x256xf32> to vector<8x64xf32>
    %22 = math.tanh %21 : vector<8x64xf32>
    %23 = vector.extract_strided_slice %20 {offsets = [0, 0], sizes = [8, 64], strides = [1, 1]} : vector<8x192xf32> to vector<8x64xf32>
    %24 = vector.extract_strided_slice %20 {offsets = [0, 64], sizes = [8, 64], strides = [1, 1]} : vector<8x192xf32> to vector<8x64xf32>
    %25 = vector.extract_strided_slice %20 {offsets = [0, 128], sizes = [8, 64], strides = [1, 1]} : vector<8x192xf32> to vector<8x64xf32>
    %26 = arith.mulf %24, %11 : vector<8x64xf32>
    %27 = arith.mulf %23, %22 : vector<8x64xf32>
    %28 = arith.addf %26, %27 : vector<8x64xf32>
    %29 = math.tanh %28 : vector<8x64xf32>
    %30 = arith.mulf %25, %29 : vector<8x64xf32>
    %31 = tpu.concatenate %30, %11 in 1 : vector<8x64xf32>, vector<8x64xf32> -> vector<8x128xf32>
    %cst_14 = arith.constant dense<0.000000e+00> : vector<8x256xf32>
    %32 = tpu.matmul %31, %7, %cst_14 {dimension_numbers = #tpu.dot_dimension_numbers<[1], [0], [0], [1], [0, 0, 1, 1], [], []>} : vector<8x128xf32>, vector<128x256xf32>, vector<8x256xf32> -> vector<8x256xf32>
    %33 = arith.addf %32, %10 : vector<8x256xf32>
    %34 = vector.extract_strided_slice %33 {offsets = [0, 0], sizes = [8, 192], strides = [1, 1]} : vector<8x256xf32> to vector<8x192xf32>
    %35 = arith.negf %34 : vector<8x192xf32>
    %36 = math.exp %35 : vector<8x192xf32>
    %cst_15 = arith.constant 1.000000e+00 : f32
    %37 = vector.broadcast %cst_15 : f32 to vector<8x192xf32>
    %38 = arith.addf %37, %36 : vector<8x192xf32>
    %39 = arith.divf %37, %38 : vector<8x192xf32>
    %40 = vector.extract_strided_slice %33 {offsets = [0, 192], sizes = [8, 64], strides = [1, 1]} : vector<8x256xf32> to vector<8x64xf32>
    %41 = math.tanh %40 : vector<8x64xf32>
    %42 = vector.extract_strided_slice %39 {offsets = [0, 0], sizes = [8, 64], strides = [1, 1]} : vector<8x192xf32> to vector<8x64xf32>
    %43 = vector.extract_strided_slice %39 {offsets = [0, 64], sizes = [8, 64], strides = [1, 1]} : vector<8x192xf32> to vector<8x64xf32>
    %44 = vector.extract_strided_slice %39 {offsets = [0, 128], sizes = [8, 64], strides = [1, 1]} : vector<8x192xf32> to vector<8x64xf32>
    %45 = arith.mulf %43, %11 : vector<8x64xf32>
    %46 = arith.mulf %42, %41 : vector<8x64xf32>
    %47 = arith.addf %45, %46 : vector<8x64xf32>
    %48 = math.tanh %47 : vector<8x64xf32>
    %49 = arith.mulf %44, %48 : vector<8x64xf32>
    %50 = vector.extract_strided_slice %5 {offsets = [8, 0], sizes = [8, 256], strides = [1, 1]} : vector<64x256xf32> to vector<8x256xf32>
    %cst_16 = arith.constant dense<0.000000e+00> : vector<8x256xf32>
    %51 = tpu.matmul %30, %6, %cst_16 {dimension_numbers = #tpu.dot_dimension_numbers<[1], [0], [0], [1], [0, 0, 1, 1], [], []>} : vector<8x64xf32>, vector<64x256xf32>, vector<8x256xf32> -> vector<8x256xf32>
    %52 = arith.addf %50, %51 : vector<8x256xf32>
    %53 = vector.extract_strided_slice %52 {offsets = [0, 0], sizes = [8, 192], strides = [1, 1]} : vector<8x256xf32> to vector<8x192xf32>
    %54 = arith.negf %53 : vector<8x192xf32>
    %55 = math.exp %54 : vector<8x192xf32>
    %cst_17 = arith.constant 1.000000e+00 : f32
    %56 = vector.broadcast %cst_17 : f32 to vector<8x192xf32>
    %57 = arith.addf %56, %55 : vector<8x192xf32>
    %58 = arith.divf %56, %57 : vector<8x192xf32>
    %59 = vector.extract_strided_slice %52 {offsets = [0, 192], sizes = [8, 64], strides = [1, 1]} : vector<8x256xf32> to vector<8x64xf32>
    %60 = math.tanh %59 : vector<8x64xf32>
    %61 = vector.extract_strided_slice %58 {offsets = [0, 0], sizes = [8, 64], strides = [1, 1]} : vector<8x192xf32> to vector<8x64xf32>
    %62 = vector.extract_strided_slice %58 {offsets = [0, 64], sizes = [8, 64], strides = [1, 1]} : vector<8x192xf32> to vector<8x64xf32>
    %63 = vector.extract_strided_slice %58 {offsets = [0, 128], sizes = [8, 64], strides = [1, 1]} : vector<8x192xf32> to vector<8x64xf32>
    %64 = arith.mulf %62, %28 : vector<8x64xf32>
    %65 = arith.mulf %61, %60 : vector<8x64xf32>
    %66 = arith.addf %64, %65 : vector<8x64xf32>
    %67 = math.tanh %66 : vector<8x64xf32>
    %68 = arith.mulf %63, %67 : vector<8x64xf32>
    %69 = tpu.concatenate %68, %49 in 1 : vector<8x64xf32>, vector<8x64xf32> -> vector<8x128xf32>
    %cst_18 = arith.constant dense<0.000000e+00> : vector<8x256xf32>
    %70 = tpu.matmul %69, %7, %cst_18 {dimension_numbers = #tpu.dot_dimension_numbers<[1], [0], [0], [1], [0, 0, 1, 1], [], []>} : vector<8x128xf32>, vector<128x256xf32>, vector<8x256xf32> -> vector<8x256xf32>
    %71 = arith.addf %70, %10 : vector<8x256xf32>
    %72 = vector.extract_strided_slice %71 {offsets = [0, 0], sizes = [8, 192], strides = [1, 1]} : vector<8x256xf32> to vector<8x192xf32>
    %73 = arith.negf %72 : vector<8x192xf32>
    %74 = math.exp %73 : vector<8x192xf32>
    %cst_19 = arith.constant 1.000000e+00 : f32
    %75 = vector.broadcast %cst_19 : f32 to vector<8x192xf32>
    %76 = arith.addf %75, %74 : vector<8x192xf32>
    %77 = arith.divf %75, %76 : vector<8x192xf32>
    %78 = vector.extract_strided_slice %71 {offsets = [0, 192], sizes = [8, 64], strides = [1, 1]} : vector<8x256xf32> to vector<8x64xf32>
    %79 = math.tanh %78 : vector<8x64xf32>
    %80 = vector.extract_strided_slice %77 {offsets = [0, 0], sizes = [8, 64], strides = [1, 1]} : vector<8x192xf32> to vector<8x64xf32>
    %81 = vector.extract_strided_slice %77 {offsets = [0, 64], sizes = [8, 64], strides = [1, 1]} : vector<8x192xf32> to vector<8x64xf32>
    %82 = vector.extract_strided_slice %77 {offsets = [0, 128], sizes = [8, 64], strides = [1, 1]} : vector<8x192xf32> to vector<8x64xf32>
    %83 = arith.mulf %81, %47 : vector<8x64xf32>
    %84 = arith.mulf %80, %79 : vector<8x64xf32>
    %85 = arith.addf %83, %84 : vector<8x64xf32>
    %86 = math.tanh %85 : vector<8x64xf32>
    %87 = arith.mulf %82, %86 : vector<8x64xf32>
    %88 = vector.extract_strided_slice %5 {offsets = [16, 0], sizes = [8, 256], strides = [1, 1]} : vector<64x256xf32> to vector<8x256xf32>
    %cst_20 = arith.constant dense<0.000000e+00> : vector<8x256xf32>
    %89 = tpu.matmul %68, %6, %cst_20 {dimension_numbers = #tpu.dot_dimension_numbers<[1], [0], [0], [1], [0, 0, 1, 1], [], []>} : vector<8x64xf32>, vector<64x256xf32>, vector<8x256xf32> -> vector<8x256xf32>
    %90 = arith.addf %88, %89 : vector<8x256xf32>
    %91 = vector.extract_strided_slice %90 {offsets = [0, 0], sizes = [8, 192], strides = [1, 1]} : vector<8x256xf32> to vector<8x192xf32>
    %92 = arith.negf %91 : vector<8x192xf32>
    %93 = math.exp %92 : vector<8x192xf32>
    %cst_21 = arith.constant 1.000000e+00 : f32
    %94 = vector.broadcast %cst_21 : f32 to vector<8x192xf32>
    %95 = arith.addf %94, %93 : vector<8x192xf32>
    %96 = arith.divf %94, %95 : vector<8x192xf32>
    %97 = vector.extract_strided_slice %90 {offsets = [0, 192], sizes = [8, 64], strides = [1, 1]} : vector<8x256xf32> to vector<8x64xf32>
    %98 = math.tanh %97 : vector<8x64xf32>
    %99 = vector.extract_strided_slice %96 {offsets = [0, 0], sizes = [8, 64], strides = [1, 1]} : vector<8x192xf32> to vector<8x64xf32>
    %100 = vector.extract_strided_slice %96 {offsets = [0, 64], sizes = [8, 64], strides = [1, 1]} : vector<8x192xf32> to vector<8x64xf32>
    %101 = vector.extract_strided_slice %96 {offsets = [0, 128], sizes = [8, 64], strides = [1, 1]} : vector<8x192xf32> to vector<8x64xf32>
    %102 = arith.mulf %100, %66 : vector<8x64xf32>
    %103 = arith.mulf %99, %98 : vector<8x64xf32>
    %104 = arith.addf %102, %103 : vector<8x64xf32>
    %105 = math.tanh %104 : vector<8x64xf32>
    %106 = arith.mulf %101, %105 : vector<8x64xf32>
    %107 = tpu.concatenate %106, %87 in 1 : vector<8x64xf32>, vector<8x64xf32> -> vector<8x128xf32>
    %cst_22 = arith.constant dense<0.000000e+00> : vector<8x256xf32>
    %108 = tpu.matmul %107, %7, %cst_22 {dimension_numbers = #tpu.dot_dimension_numbers<[1], [0], [0], [1], [0, 0, 1, 1], [], []>} : vector<8x128xf32>, vector<128x256xf32>, vector<8x256xf32> -> vector<8x256xf32>
    %109 = arith.addf %108, %10 : vector<8x256xf32>
    %110 = vector.extract_strided_slice %109 {offsets = [0, 0], sizes = [8, 192], strides = [1, 1]} : vector<8x256xf32> to vector<8x192xf32>
    %111 = arith.negf %110 : vector<8x192xf32>
    %112 = math.exp %111 : vector<8x192xf32>
    %cst_23 = arith.constant 1.000000e+00 : f32
    %113 = vector.broadcast %cst_23 : f32 to vector<8x192xf32>
    %114 = arith.addf %113, %112 : vector<8x192xf32>
    %115 = arith.divf %113, %114 : vector<8x192xf32>
    %116 = vector.extract_strided_slice %109 {offsets = [0, 192], sizes = [8, 64], strides = [1, 1]} : vector<8x256xf32> to vector<8x64xf32>
    %117 = math.tanh %116 : vector<8x64xf32>
    %118 = vector.extract_strided_slice %115 {offsets = [0, 0], sizes = [8, 64], strides = [1, 1]} : vector<8x192xf32> to vector<8x64xf32>
    %119 = vector.extract_strided_slice %115 {offsets = [0, 64], sizes = [8, 64], strides = [1, 1]} : vector<8x192xf32> to vector<8x64xf32>
    %120 = vector.extract_strided_slice %115 {offsets = [0, 128], sizes = [8, 64], strides = [1, 1]} : vector<8x192xf32> to vector<8x64xf32>
    %121 = arith.mulf %119, %85 : vector<8x64xf32>
    %122 = arith.mulf %118, %117 : vector<8x64xf32>
    %123 = arith.addf %121, %122 : vector<8x64xf32>
    %124 = math.tanh %123 : vector<8x64xf32>
    %125 = arith.mulf %120, %124 : vector<8x64xf32>
    %126 = vector.extract_strided_slice %5 {offsets = [24, 0], sizes = [8, 256], strides = [1, 1]} : vector<64x256xf32> to vector<8x256xf32>
    %cst_24 = arith.constant dense<0.000000e+00> : vector<8x256xf32>
    %127 = tpu.matmul %106, %6, %cst_24 {dimension_numbers = #tpu.dot_dimension_numbers<[1], [0], [0], [1], [0, 0, 1, 1], [], []>} : vector<8x64xf32>, vector<64x256xf32>, vector<8x256xf32> -> vector<8x256xf32>
    %128 = arith.addf %126, %127 : vector<8x256xf32>
    %129 = vector.extract_strided_slice %128 {offsets = [0, 0], sizes = [8, 192], strides = [1, 1]} : vector<8x256xf32> to vector<8x192xf32>
    %130 = arith.negf %129 : vector<8x192xf32>
    %131 = math.exp %130 : vector<8x192xf32>
    %cst_25 = arith.constant 1.000000e+00 : f32
    %132 = vector.broadcast %cst_25 : f32 to vector<8x192xf32>
    %133 = arith.addf %132, %131 : vector<8x192xf32>
    %134 = arith.divf %132, %133 : vector<8x192xf32>
    %135 = vector.extract_strided_slice %128 {offsets = [0, 192], sizes = [8, 64], strides = [1, 1]} : vector<8x256xf32> to vector<8x64xf32>
    %136 = math.tanh %135 : vector<8x64xf32>
    %137 = vector.extract_strided_slice %134 {offsets = [0, 0], sizes = [8, 64], strides = [1, 1]} : vector<8x192xf32> to vector<8x64xf32>
    %138 = vector.extract_strided_slice %134 {offsets = [0, 64], sizes = [8, 64], strides = [1, 1]} : vector<8x192xf32> to vector<8x64xf32>
    %139 = vector.extract_strided_slice %134 {offsets = [0, 128], sizes = [8, 64], strides = [1, 1]} : vector<8x192xf32> to vector<8x64xf32>
    %140 = arith.mulf %138, %104 : vector<8x64xf32>
    %141 = arith.mulf %137, %136 : vector<8x64xf32>
    %142 = arith.addf %140, %141 : vector<8x64xf32>
    %143 = math.tanh %142 : vector<8x64xf32>
    %144 = arith.mulf %139, %143 : vector<8x64xf32>
    %145 = tpu.concatenate %144, %125 in 1 : vector<8x64xf32>, vector<8x64xf32> -> vector<8x128xf32>
    %cst_26 = arith.constant dense<0.000000e+00> : vector<8x256xf32>
    %146 = tpu.matmul %145, %7, %cst_26 {dimension_numbers = #tpu.dot_dimension_numbers<[1], [0], [0], [1], [0, 0, 1, 1], [], []>} : vector<8x128xf32>, vector<128x256xf32>, vector<8x256xf32> -> vector<8x256xf32>
    %147 = arith.addf %146, %10 : vector<8x256xf32>
    %148 = vector.extract_strided_slice %147 {offsets = [0, 0], sizes = [8, 192], strides = [1, 1]} : vector<8x256xf32> to vector<8x192xf32>
    %149 = arith.negf %148 : vector<8x192xf32>
    %150 = math.exp %149 : vector<8x192xf32>
    %cst_27 = arith.constant 1.000000e+00 : f32
    %151 = vector.broadcast %cst_27 : f32 to vector<8x192xf32>
    %152 = arith.addf %151, %150 : vector<8x192xf32>
    %153 = arith.divf %151, %152 : vector<8x192xf32>
    %154 = vector.extract_strided_slice %147 {offsets = [0, 192], sizes = [8, 64], strides = [1, 1]} : vector<8x256xf32> to vector<8x64xf32>
    %155 = math.tanh %154 : vector<8x64xf32>
    %156 = vector.extract_strided_slice %153 {offsets = [0, 0], sizes = [8, 64], strides = [1, 1]} : vector<8x192xf32> to vector<8x64xf32>
    %157 = vector.extract_strided_slice %153 {offsets = [0, 64], sizes = [8, 64], strides = [1, 1]} : vector<8x192xf32> to vector<8x64xf32>
    %158 = vector.extract_strided_slice %153 {offsets = [0, 128], sizes = [8, 64], strides = [1, 1]} : vector<8x192xf32> to vector<8x64xf32>
    %159 = arith.mulf %157, %123 : vector<8x64xf32>
    %160 = arith.mulf %156, %155 : vector<8x64xf32>
    %161 = arith.addf %159, %160 : vector<8x64xf32>
    %162 = math.tanh %161 : vector<8x64xf32>
    %163 = arith.mulf %158, %162 : vector<8x64xf32>
    %164 = vector.extract_strided_slice %5 {offsets = [32, 0], sizes = [8, 256], strides = [1, 1]} : vector<64x256xf32> to vector<8x256xf32>
    %cst_28 = arith.constant dense<0.000000e+00> : vector<8x256xf32>
    %165 = tpu.matmul %144, %6, %cst_28 {dimension_numbers = #tpu.dot_dimension_numbers<[1], [0], [0], [1], [0, 0, 1, 1], [], []>} : vector<8x64xf32>, vector<64x256xf32>, vector<8x256xf32> -> vector<8x256xf32>
    %166 = arith.addf %164, %165 : vector<8x256xf32>
    %167 = vector.extract_strided_slice %166 {offsets = [0, 0], sizes = [8, 192], strides = [1, 1]} : vector<8x256xf32> to vector<8x192xf32>
    %168 = arith.negf %167 : vector<8x192xf32>
    %169 = math.exp %168 : vector<8x192xf32>
    %cst_29 = arith.constant 1.000000e+00 : f32
    %170 = vector.broadcast %cst_29 : f32 to vector<8x192xf32>
    %171 = arith.addf %170, %169 : vector<8x192xf32>
    %172 = arith.divf %170, %171 : vector<8x192xf32>
    %173 = vector.extract_strided_slice %166 {offsets = [0, 192], sizes = [8, 64], strides = [1, 1]} : vector<8x256xf32> to vector<8x64xf32>
    %174 = math.tanh %173 : vector<8x64xf32>
    %175 = vector.extract_strided_slice %172 {offsets = [0, 0], sizes = [8, 64], strides = [1, 1]} : vector<8x192xf32> to vector<8x64xf32>
    %176 = vector.extract_strided_slice %172 {offsets = [0, 64], sizes = [8, 64], strides = [1, 1]} : vector<8x192xf32> to vector<8x64xf32>
    %177 = vector.extract_strided_slice %172 {offsets = [0, 128], sizes = [8, 64], strides = [1, 1]} : vector<8x192xf32> to vector<8x64xf32>
    %178 = arith.mulf %176, %142 : vector<8x64xf32>
    %179 = arith.mulf %175, %174 : vector<8x64xf32>
    %180 = arith.addf %178, %179 : vector<8x64xf32>
    %181 = math.tanh %180 : vector<8x64xf32>
    %182 = arith.mulf %177, %181 : vector<8x64xf32>
    %183 = tpu.concatenate %182, %163 in 1 : vector<8x64xf32>, vector<8x64xf32> -> vector<8x128xf32>
    %cst_30 = arith.constant dense<0.000000e+00> : vector<8x256xf32>
    %184 = tpu.matmul %183, %7, %cst_30 {dimension_numbers = #tpu.dot_dimension_numbers<[1], [0], [0], [1], [0, 0, 1, 1], [], []>} : vector<8x128xf32>, vector<128x256xf32>, vector<8x256xf32> -> vector<8x256xf32>
    %185 = arith.addf %184, %10 : vector<8x256xf32>
    %186 = vector.extract_strided_slice %185 {offsets = [0, 0], sizes = [8, 192], strides = [1, 1]} : vector<8x256xf32> to vector<8x192xf32>
    %187 = arith.negf %186 : vector<8x192xf32>
    %188 = math.exp %187 : vector<8x192xf32>
    %cst_31 = arith.constant 1.000000e+00 : f32
    %189 = vector.broadcast %cst_31 : f32 to vector<8x192xf32>
    %190 = arith.addf %189, %188 : vector<8x192xf32>
    %191 = arith.divf %189, %190 : vector<8x192xf32>
    %192 = vector.extract_strided_slice %185 {offsets = [0, 192], sizes = [8, 64], strides = [1, 1]} : vector<8x256xf32> to vector<8x64xf32>
    %193 = math.tanh %192 : vector<8x64xf32>
    %194 = vector.extract_strided_slice %191 {offsets = [0, 0], sizes = [8, 64], strides = [1, 1]} : vector<8x192xf32> to vector<8x64xf32>
    %195 = vector.extract_strided_slice %191 {offsets = [0, 64], sizes = [8, 64], strides = [1, 1]} : vector<8x192xf32> to vector<8x64xf32>
    %196 = vector.extract_strided_slice %191 {offsets = [0, 128], sizes = [8, 64], strides = [1, 1]} : vector<8x192xf32> to vector<8x64xf32>
    %197 = arith.mulf %195, %161 : vector<8x64xf32>
    %198 = arith.mulf %194, %193 : vector<8x64xf32>
    %199 = arith.addf %197, %198 : vector<8x64xf32>
    %200 = math.tanh %199 : vector<8x64xf32>
    %201 = arith.mulf %196, %200 : vector<8x64xf32>
    %202 = vector.extract_strided_slice %5 {offsets = [40, 0], sizes = [8, 256], strides = [1, 1]} : vector<64x256xf32> to vector<8x256xf32>
    %cst_32 = arith.constant dense<0.000000e+00> : vector<8x256xf32>
    %203 = tpu.matmul %182, %6, %cst_32 {dimension_numbers = #tpu.dot_dimension_numbers<[1], [0], [0], [1], [0, 0, 1, 1], [], []>} : vector<8x64xf32>, vector<64x256xf32>, vector<8x256xf32> -> vector<8x256xf32>
    %204 = arith.addf %202, %203 : vector<8x256xf32>
    %205 = vector.extract_strided_slice %204 {offsets = [0, 0], sizes = [8, 192], strides = [1, 1]} : vector<8x256xf32> to vector<8x192xf32>
    %206 = arith.negf %205 : vector<8x192xf32>
    %207 = math.exp %206 : vector<8x192xf32>
    %cst_33 = arith.constant 1.000000e+00 : f32
    %208 = vector.broadcast %cst_33 : f32 to vector<8x192xf32>
    %209 = arith.addf %208, %207 : vector<8x192xf32>
    %210 = arith.divf %208, %209 : vector<8x192xf32>
    %211 = vector.extract_strided_slice %204 {offsets = [0, 192], sizes = [8, 64], strides = [1, 1]} : vector<8x256xf32> to vector<8x64xf32>
    %212 = math.tanh %211 : vector<8x64xf32>
    %213 = vector.extract_strided_slice %210 {offsets = [0, 0], sizes = [8, 64], strides = [1, 1]} : vector<8x192xf32> to vector<8x64xf32>
    %214 = vector.extract_strided_slice %210 {offsets = [0, 64], sizes = [8, 64], strides = [1, 1]} : vector<8x192xf32> to vector<8x64xf32>
    %215 = vector.extract_strided_slice %210 {offsets = [0, 128], sizes = [8, 64], strides = [1, 1]} : vector<8x192xf32> to vector<8x64xf32>
    %216 = arith.mulf %214, %180 : vector<8x64xf32>
    %217 = arith.mulf %213, %212 : vector<8x64xf32>
    %218 = arith.addf %216, %217 : vector<8x64xf32>
    %219 = math.tanh %218 : vector<8x64xf32>
    %220 = arith.mulf %215, %219 : vector<8x64xf32>
    %221 = tpu.concatenate %220, %201 in 1 : vector<8x64xf32>, vector<8x64xf32> -> vector<8x128xf32>
    %cst_34 = arith.constant dense<0.000000e+00> : vector<8x256xf32>
    %222 = tpu.matmul %221, %7, %cst_34 {dimension_numbers = #tpu.dot_dimension_numbers<[1], [0], [0], [1], [0, 0, 1, 1], [], []>} : vector<8x128xf32>, vector<128x256xf32>, vector<8x256xf32> -> vector<8x256xf32>
    %223 = arith.addf %222, %10 : vector<8x256xf32>
    %224 = vector.extract_strided_slice %223 {offsets = [0, 0], sizes = [8, 192], strides = [1, 1]} : vector<8x256xf32> to vector<8x192xf32>
    %225 = arith.negf %224 : vector<8x192xf32>
    %226 = math.exp %225 : vector<8x192xf32>
    %cst_35 = arith.constant 1.000000e+00 : f32
    %227 = vector.broadcast %cst_35 : f32 to vector<8x192xf32>
    %228 = arith.addf %227, %226 : vector<8x192xf32>
    %229 = arith.divf %227, %228 : vector<8x192xf32>
    %230 = vector.extract_strided_slice %223 {offsets = [0, 192], sizes = [8, 64], strides = [1, 1]} : vector<8x256xf32> to vector<8x64xf32>
    %231 = math.tanh %230 : vector<8x64xf32>
    %232 = vector.extract_strided_slice %229 {offsets = [0, 0], sizes = [8, 64], strides = [1, 1]} : vector<8x192xf32> to vector<8x64xf32>
    %233 = vector.extract_strided_slice %229 {offsets = [0, 64], sizes = [8, 64], strides = [1, 1]} : vector<8x192xf32> to vector<8x64xf32>
    %234 = vector.extract_strided_slice %229 {offsets = [0, 128], sizes = [8, 64], strides = [1, 1]} : vector<8x192xf32> to vector<8x64xf32>
    %235 = arith.mulf %233, %199 : vector<8x64xf32>
    %236 = arith.mulf %232, %231 : vector<8x64xf32>
    %237 = arith.addf %235, %236 : vector<8x64xf32>
    %238 = math.tanh %237 : vector<8x64xf32>
    %239 = arith.mulf %234, %238 : vector<8x64xf32>
    %240 = vector.extract_strided_slice %5 {offsets = [48, 0], sizes = [8, 256], strides = [1, 1]} : vector<64x256xf32> to vector<8x256xf32>
    %cst_36 = arith.constant dense<0.000000e+00> : vector<8x256xf32>
    %241 = tpu.matmul %220, %6, %cst_36 {dimension_numbers = #tpu.dot_dimension_numbers<[1], [0], [0], [1], [0, 0, 1, 1], [], []>} : vector<8x64xf32>, vector<64x256xf32>, vector<8x256xf32> -> vector<8x256xf32>
    %242 = arith.addf %240, %241 : vector<8x256xf32>
    %243 = vector.extract_strided_slice %242 {offsets = [0, 0], sizes = [8, 192], strides = [1, 1]} : vector<8x256xf32> to vector<8x192xf32>
    %244 = arith.negf %243 : vector<8x192xf32>
    %245 = math.exp %244 : vector<8x192xf32>
    %cst_37 = arith.constant 1.000000e+00 : f32
    %246 = vector.broadcast %cst_37 : f32 to vector<8x192xf32>
    %247 = arith.addf %246, %245 : vector<8x192xf32>
    %248 = arith.divf %246, %247 : vector<8x192xf32>
    %249 = vector.extract_strided_slice %242 {offsets = [0, 192], sizes = [8, 64], strides = [1, 1]} : vector<8x256xf32> to vector<8x64xf32>
    %250 = math.tanh %249 : vector<8x64xf32>
    %251 = vector.extract_strided_slice %248 {offsets = [0, 0], sizes = [8, 64], strides = [1, 1]} : vector<8x192xf32> to vector<8x64xf32>
    %252 = vector.extract_strided_slice %248 {offsets = [0, 64], sizes = [8, 64], strides = [1, 1]} : vector<8x192xf32> to vector<8x64xf32>
    %253 = vector.extract_strided_slice %248 {offsets = [0, 128], sizes = [8, 64], strides = [1, 1]} : vector<8x192xf32> to vector<8x64xf32>
    %254 = arith.mulf %252, %218 : vector<8x64xf32>
    %255 = arith.mulf %251, %250 : vector<8x64xf32>
    %256 = arith.addf %254, %255 : vector<8x64xf32>
    %257 = math.tanh %256 : vector<8x64xf32>
    %258 = arith.mulf %253, %257 : vector<8x64xf32>
    %259 = tpu.concatenate %258, %239 in 1 : vector<8x64xf32>, vector<8x64xf32> -> vector<8x128xf32>
    %cst_38 = arith.constant dense<0.000000e+00> : vector<8x256xf32>
    %260 = tpu.matmul %259, %7, %cst_38 {dimension_numbers = #tpu.dot_dimension_numbers<[1], [0], [0], [1], [0, 0, 1, 1], [], []>} : vector<8x128xf32>, vector<128x256xf32>, vector<8x256xf32> -> vector<8x256xf32>
    %261 = arith.addf %260, %10 : vector<8x256xf32>
    %262 = vector.extract_strided_slice %261 {offsets = [0, 0], sizes = [8, 192], strides = [1, 1]} : vector<8x256xf32> to vector<8x192xf32>
    %263 = arith.negf %262 : vector<8x192xf32>
    %264 = math.exp %263 : vector<8x192xf32>
    %cst_39 = arith.constant 1.000000e+00 : f32
    %265 = vector.broadcast %cst_39 : f32 to vector<8x192xf32>
    %266 = arith.addf %265, %264 : vector<8x192xf32>
    %267 = arith.divf %265, %266 : vector<8x192xf32>
    %268 = vector.extract_strided_slice %261 {offsets = [0, 192], sizes = [8, 64], strides = [1, 1]} : vector<8x256xf32> to vector<8x64xf32>
    %269 = math.tanh %268 : vector<8x64xf32>
    %270 = vector.extract_strided_slice %267 {offsets = [0, 0], sizes = [8, 64], strides = [1, 1]} : vector<8x192xf32> to vector<8x64xf32>
    %271 = vector.extract_strided_slice %267 {offsets = [0, 64], sizes = [8, 64], strides = [1, 1]} : vector<8x192xf32> to vector<8x64xf32>
    %272 = vector.extract_strided_slice %267 {offsets = [0, 128], sizes = [8, 64], strides = [1, 1]} : vector<8x192xf32> to vector<8x64xf32>
    %273 = arith.mulf %271, %237 : vector<8x64xf32>
    %274 = arith.mulf %270, %269 : vector<8x64xf32>
    %275 = arith.addf %273, %274 : vector<8x64xf32>
    %276 = math.tanh %275 : vector<8x64xf32>
    %277 = arith.mulf %272, %276 : vector<8x64xf32>
    %278 = vector.extract_strided_slice %5 {offsets = [56, 0], sizes = [8, 256], strides = [1, 1]} : vector<64x256xf32> to vector<8x256xf32>
    %cst_40 = arith.constant dense<0.000000e+00> : vector<8x256xf32>
    %279 = tpu.matmul %258, %6, %cst_40 {dimension_numbers = #tpu.dot_dimension_numbers<[1], [0], [0], [1], [0, 0, 1, 1], [], []>} : vector<8x64xf32>, vector<64x256xf32>, vector<8x256xf32> -> vector<8x256xf32>
    %280 = arith.addf %278, %279 : vector<8x256xf32>
    %281 = vector.extract_strided_slice %280 {offsets = [0, 0], sizes = [8, 192], strides = [1, 1]} : vector<8x256xf32> to vector<8x192xf32>
    %282 = arith.negf %281 : vector<8x192xf32>
    %283 = math.exp %282 : vector<8x192xf32>
    %cst_41 = arith.constant 1.000000e+00 : f32
    %284 = vector.broadcast %cst_41 : f32 to vector<8x192xf32>
    %285 = arith.addf %284, %283 : vector<8x192xf32>
    %286 = arith.divf %284, %285 : vector<8x192xf32>
    %287 = vector.extract_strided_slice %280 {offsets = [0, 192], sizes = [8, 64], strides = [1, 1]} : vector<8x256xf32> to vector<8x64xf32>
    %288 = math.tanh %287 : vector<8x64xf32>
    %289 = vector.extract_strided_slice %286 {offsets = [0, 0], sizes = [8, 64], strides = [1, 1]} : vector<8x192xf32> to vector<8x64xf32>
    %290 = vector.extract_strided_slice %286 {offsets = [0, 64], sizes = [8, 64], strides = [1, 1]} : vector<8x192xf32> to vector<8x64xf32>
    %291 = vector.extract_strided_slice %286 {offsets = [0, 128], sizes = [8, 64], strides = [1, 1]} : vector<8x192xf32> to vector<8x64xf32>
    %292 = arith.mulf %290, %256 : vector<8x64xf32>
    %293 = arith.mulf %289, %288 : vector<8x64xf32>
    %294 = arith.addf %292, %293 : vector<8x64xf32>
    %295 = math.tanh %294 : vector<8x64xf32>
    %296 = arith.mulf %291, %295 : vector<8x64xf32>
    %297 = tpu.concatenate %296, %277 in 1 : vector<8x64xf32>, vector<8x64xf32> -> vector<8x128xf32>
    %cst_42 = arith.constant dense<0.000000e+00> : vector<8x256xf32>
    %298 = tpu.matmul %297, %7, %cst_42 {dimension_numbers = #tpu.dot_dimension_numbers<[1], [0], [0], [1], [0, 0, 1, 1], [], []>} : vector<8x128xf32>, vector<128x256xf32>, vector<8x256xf32> -> vector<8x256xf32>
    %299 = arith.addf %298, %10 : vector<8x256xf32>
    %300 = vector.extract_strided_slice %299 {offsets = [0, 0], sizes = [8, 192], strides = [1, 1]} : vector<8x256xf32> to vector<8x192xf32>
    %301 = arith.negf %300 : vector<8x192xf32>
    %302 = math.exp %301 : vector<8x192xf32>
    %cst_43 = arith.constant 1.000000e+00 : f32
    %303 = vector.broadcast %cst_43 : f32 to vector<8x192xf32>
    %304 = arith.addf %303, %302 : vector<8x192xf32>
    %305 = arith.divf %303, %304 : vector<8x192xf32>
    %306 = vector.extract_strided_slice %299 {offsets = [0, 192], sizes = [8, 64], strides = [1, 1]} : vector<8x256xf32> to vector<8x64xf32>
    %307 = math.tanh %306 : vector<8x64xf32>
    %308 = vector.extract_strided_slice %305 {offsets = [0, 0], sizes = [8, 64], strides = [1, 1]} : vector<8x192xf32> to vector<8x64xf32>
    %309 = vector.extract_strided_slice %305 {offsets = [0, 64], sizes = [8, 64], strides = [1, 1]} : vector<8x192xf32> to vector<8x64xf32>
    %310 = vector.extract_strided_slice %305 {offsets = [0, 128], sizes = [8, 64], strides = [1, 1]} : vector<8x192xf32> to vector<8x64xf32>
    %311 = arith.mulf %309, %275 : vector<8x64xf32>
    %312 = arith.mulf %308, %307 : vector<8x64xf32>
    %313 = arith.addf %311, %312 : vector<8x64xf32>
    %314 = math.tanh %313 : vector<8x64xf32>
    %315 = arith.mulf %310, %314 : vector<8x64xf32>
    %c0_44 = arith.constant 0 : index
    %c0_45 = arith.constant 0 : index
    %316 = vector.load %arg7[%c0_44, %c0_45] : memref<64x16xf32, #tpu.memory_space<vmem>>, vector<64x16xf32>
    %cst_46 = arith.constant dense<0.000000e+00> : vector<8x16xf32>
    %317 = tpu.matmul %315, %316, %cst_46 {dimension_numbers = #tpu.dot_dimension_numbers<[1], [0], [0], [1], [0, 0, 1, 1], [], []>} : vector<8x64xf32>, vector<64x16xf32>, vector<8x16xf32> -> vector<8x16xf32>
    %c0_47 = arith.constant 0 : index
    %c0_48 = arith.constant 0 : index
    %318 = vector.load %arg8[%c0_47, %c0_48] : memref<1x16xf32, #tpu.memory_space<vmem>>, vector<1x16xf32>
    %319 = vector.broadcast %318 : vector<1x16xf32> to vector<8x16xf32>
    %320 = arith.addf %317, %319 : vector<8x16xf32>
    %c0_49 = arith.constant 0 : index
    %c0_50 = arith.constant 0 : index
    %321 = vector.load %arg1[%c0_49, %c0_50] : memref<8x8xf32, #tpu.memory_space<vmem>>, vector<8x8xf32>
    %c0_51 = arith.constant 0 : index
    %c0_52 = arith.constant 0 : index
    %322 = vector.load %arg9[%c0_51, %c0_52] : memref<8x16xf32, #tpu.memory_space<vmem>>, vector<8x16xf32>
    %cst_53 = arith.constant dense<0.000000e+00> : vector<8x16xf32>
    %323 = tpu.matmul %321, %322, %cst_53 {dimension_numbers = #tpu.dot_dimension_numbers<[1], [0], [0], [1], [0, 0, 1, 1], [], []>} : vector<8x8xf32>, vector<8x16xf32>, vector<8x16xf32> -> vector<8x16xf32>
    %c0_54 = arith.constant 0 : index
    %c0_55 = arith.constant 0 : index
    %324 = vector.load %arg10[%c0_54, %c0_55] : memref<1x16xf32, #tpu.memory_space<vmem>>, vector<1x16xf32>
    %325 = vector.broadcast %324 : vector<1x16xf32> to vector<8x16xf32>
    %326 = arith.addf %323, %325 : vector<8x16xf32>
    %c0_56 = arith.constant 0 : index
    %c0_57 = arith.constant 0 : index
    %327 = vector.load %arg11[%c0_56, %c0_57] : memref<32x16xf32, #tpu.memory_space<vmem>>, vector<32x16xf32>
    %328 = vector.extract_strided_slice %327 {offsets = [0, 0], sizes = [16, 16], strides = [1, 1]} : vector<32x16xf32> to vector<16x16xf32>
    %cst_58 = arith.constant dense<0.000000e+00> : vector<8x16xf32>
    %329 = tpu.matmul %320, %328, %cst_58 {dimension_numbers = #tpu.dot_dimension_numbers<[1], [0], [0], [1], [0, 0, 1, 1], [], []>} : vector<8x16xf32>, vector<16x16xf32>, vector<8x16xf32> -> vector<8x16xf32>
    %330 = vector.extract_strided_slice %327 {offsets = [16, 0], sizes = [16, 16], strides = [1, 1]} : vector<32x16xf32> to vector<16x16xf32>
    %cst_59 = arith.constant dense<0.000000e+00> : vector<8x16xf32>
    %331 = tpu.matmul %326, %330, %cst_59 {dimension_numbers = #tpu.dot_dimension_numbers<[1], [0], [0], [1], [0, 0, 1, 1], [], []>} : vector<8x16xf32>, vector<16x16xf32>, vector<8x16xf32> -> vector<8x16xf32>
    %332 = arith.addf %329, %331 : vector<8x16xf32>
    %c0_60 = arith.constant 0 : index
    %c0_61 = arith.constant 0 : index
    %333 = vector.load %arg12[%c0_60, %c0_61] : memref<1x16xf32, #tpu.memory_space<vmem>>, vector<1x16xf32>
    %334 = vector.broadcast %333 : vector<1x16xf32> to vector<8x16xf32>
    %335 = arith.addf %332, %334 : vector<8x16xf32>
    %c0_62 = arith.constant 0 : index
    %c0_63 = arith.constant 0 : index
    %336 = vector.load %arg13[%c0_62, %c0_63] : memref<8x16xf32, #tpu.memory_space<vmem>>, vector<8x16xf32>
    tpu.vector_store %arg13[%c0_62, %c0_63], %335 {strides = array<i32>} : memref<8x16xf32, #tpu.memory_space<vmem>>, vector<8x16xf32>,
    return
  }
}

</mosaic_0001>

<bundles_post_ra>
// kernel: tpu_custom_call.1
= control target key start
LH: loop header
LB: loop body
LE: loop exit
PB: predicated region body
PF: predicated region fallthrough
CT: control target
= control target key end

     0   :  { %18 = vsyncpa [#allocation3], 0  ;;  %s3830_s0 = inlined_call_operand.vmem [shape: f32[64,16], index: 0, kind: input, shape index: {}]   ;;  %s3831_s1 = inlined_call_operand.vmem [shape: f32[8,8], index: 1, kind: input, shape index: {}]   ;;  %s3832_s2 = inlined_call_operand.vmem [shape: f32[16,256], index: 2, kind: input, shape index: {}]   ;;  %s3833_s3 = inlined_call_operand.vmem [shape: f32[64,256], index: 3, kind: input, shape index: {}]   ;;  %s3834_s4 = inlined_call_operand.vmem [shape: f32[1,256], index: 4, kind: input, shape index: {}]   ;;  %s3835_s5 = inlined_call_operand.hbm [shape: f32[128,256], index: 5, kind: input, shape index: {}]   ;;  %s3836_s6 = inlined_call_operand.vmem [shape: f32[1,256], index: 6, kind: input, shape index: {}]   ;;  %s3837_s7 = inlined_call_operand.vmem [shape: f32[64,16], index: 7, kind: input, shape index: {}]   ;;  %s3838_s8 = inlined_call_operand.vmem [shape: f32[1,16], index: 8, kind: input, shape index: {}]   ;;  %s3839_s9 = inlined_call_operand.vmem [shape: f32[8,16], index: 9, kind: input, shape index: {}]   ;;  %s3840_s10 = inlined_call_operand.vmem [shape: f32[1,16], index: 10, kind: input, shape index: {}]   ;;  %s3841_s11 = inlined_call_operand.vmem [shape: f32[32,16], index: 11, kind: input, shape index: {}]   ;;  %s3842_s12 = inlined_call_operand.vmem [shape: f32[1,16], index: 12, kind: input, shape index: {}]   ;;  %s3843_s13 = inlined_call_operand.hbm [shape: f32[8,16], index: 13, kind: output, shape index: {}]  }
   0x1   :  { %19 = vsyncpa [#allocation4], 0  ;;  %s3115_s25 = smov [#allocation2]   ;;  %s3067_s29 = scalar_lea.hbm %s3835_s5, 4096 }
   0x2   :  { %s35_s26 = sshll.u32 %s3115_s25, 4  ;;  %p3068_p0 = scmp.ne.s32.totalorder %s3835_s5, %s3067_s29  ;;  %s36_s26 = int_to_ptr.vmem [resolvable:$true] %s35_s26 }
   0x3   :  { %p3071_p1 = scmp.lt.u32.totalorder %s3067_s29, %s3835_s5 }
   0x5   :  { %p3073_p2 = pnand %p3071_p1, %p3068_p0 }
   0x7   :  { %3076 = shalt.err (!%p3073_p2)
}
   0x8   :  { %s3077_s17 = scalar_lea.vmem %s36_s26, 4096  ;;  %p3082_p4 = scmp.lt.s32.totalorder %s36_s26, %s36_s26 }
   0x9   :  { %p3078_p3 = scmp.ne.s32.totalorder %s36_s26, %s3077_s17  ;;  %p3083_p5 = scmp.lt.s32.totalorder %s3077_s17, %s3077_s17 }
   0xb   :  { %p3084_p6 = por %p3083_p5, %p3082_p4 }
   0xd   :  { %p3085_p7 = pnand %p3084_p6, %p3078_p3 }
   0xf   :  { %3088 = shalt.err (!%p3085_p7)
}
  0x10   :  { %s3116_s18 = smov 256   ;;  %s3117_s19 = smov 16  }
  0x11   :  { %41 = dma.hbm_to_vmem [thread:$0]  %s3835_s5, 4096, %s36_s26, [#allocation3], %s3116_s18, %s3116_s18, %s3117_s19  }
  0x12   :  { %3111 = dma.done.wait [#allocation3], 4096  }
  0x13   :  { %3112 = vsyncadd [#allocation3], 4294963200  ;;  %v3118_v0 = vmov 0.0   ;;  %v68_v1 = vld [vmem:[%s3832_s2 + $0x8] sm:$0xff]  ;;  %v70_v2 = vld [vmem:[%s3832_s2 + $0x18] sm:$0xff]  ;;  %vm83_vm0 = vcmask 130048   ;;  %v73_v39 = vlaneseq }
  0x14   :  { %172 = vmatprep.mubr.f32.mxu0 %v3118_v0  ;;  %453 = vmatprep.mubr.f32.mxu1 %v3118_v0  ;;  %v67_v3 = vld [vmem:[%s3832_s2] sm:$0xff]  ;;  %v2429_v4 = vpack.c.bf16 %v70_v2, %v68_v1  ;;  %v69_v5 = vld [vmem:[%s3832_s2 + $0x10] sm:$0xff]  ;;  %v222_v6 = vld [vmem:[%s3833_s3 + $0x8] sm:$0xff]  ;;  %s3119_s21 = smov 64   ;;  %vm281_vm1 = vcmask 523264   ;;  %vm3121_vm2 = vmmov 0  }
  0x15   :  { %v2431_v7 = vpack.c.bf16 %v69_v5, %v67_v3  ;;  %v224_v8 = vld [vmem:[%s3833_s3 + $0x18] sm:$0xff]  ;;  %v221_v9 = vld [vmem:[%s3833_s3] sm:$0xff]  ;;  %v223_v10 = vld [vmem:[%s3833_s3 + $0x10] sm:$0xff]  ;;  %v3342_v40 = vshrl.u32 %v73_v39, 7  ;;  %vm2071_vm3 = vcmask 64512  }
  0x16   :  { %2430 = vmatprep.subr.bf16.mxu0 %v2429_v4  ;;  %v3231_v11 = vpack.c.bf16 %v224_v8, %v222_v6  ;;  %v226_v12 = vld [vmem:[%s3833_s3 + $0x28] sm:$0xff]  ;;  %v59_v13 = vld [vmem:[%s3830_s0] sm:$0xff]  ;;  %v3239_v14 = vpack.c.bf16 %v223_v10, %v221_v9  ;;  %v228_v15 = vld [vmem:[%s3833_s3 + $0x38] sm:$0xff] }
  0x17   :  { %2432 = vmatpush1.bf16.msra.mxu0 %v2431_v7  ;;  %v3245_v16 = vpack.c.bf16 %v228_v15, %v226_v12  ;;  %v225_v17 = vld [vmem:[%s3833_s3 + $0x20] sm:$0xff]  ;;  %v227_v18 = vld [vmem:[%s3833_s3 + $0x30] sm:$0xff]  ;;  %v230_v19 = vld [vmem:[%s3833_s3 + $0x48] sm:$0xff]  ;;  %v79_v41 = vsub.s32 1, %v3342_v40  ;;  %v75_v48 = vsub.s32 0, %v3342_v40 }
  0x18   :  { %2434 = vmatprep.subr.bf16.mxu0 %v3231_v11  ;;  %v232_v20 = vld [vmem:[%s3833_s3 + $0x58] sm:$0xff]  ;;  %v60_v21 = vld [vmem:[%s3830_s0 + $0x8] sm:$0xff]  ;;  %v3265_v22 = vpack.c.bf16 %v227_v18, %v225_v17  ;;  %v229_v24 = vld [vmem:[%s3833_s3 + $0x40] sm:$0xff] }
  0x19   :  { %v3268_v23 = vpack.c.bf16 %v232_v20, %v230_v19  ;;  %v231_v25 = vld [vmem:[%s3833_s3 + $0x50] sm:$0xff]  ;;  %v234_v26 = vld [vmem:[%s3833_s3 + $0x68] sm:$0xff]  ;;  %v236_v27 = vld [vmem:[%s3833_s3 + $0x78] sm:$0xff] }
  0x1a   :  { %2319 = vmatmul.mubr.msk.f32.vlgmr.msra.gmra.mrb[0].mxu0 %vm83_vm0, %v59_v13  ;;  %v61_v28 = vld [vmem:[%s3830_s0 + $0x10] sm:$0xff]  ;;  %v3288_v29 = vpack.c.bf16 %v231_v25, %v229_v24  ;;  %v3291_v30 = vpack.c.bf16 %v236_v27, %v234_v26  ;;  %v233_v31 = vld [vmem:[%s3833_s3 + $0x60] sm:$0xff]  ;;  %v62_v33 = vld [vmem:[%s3830_s0 + $0x18] sm:$0xff] }
  0x1b   :  { %2436 = vmatpush1.bf16.msra.mxu0 %v3239_v14  ;;  %178 = vmatprep.mubr.f32.mxu0 %v3118_v0  ;;  %v235_v32 = vld [vmem:[%s3833_s3 + $0x70] sm:$0xff]  ;;  %v63_v35 = vld [vmem:[%s3830_s0 + $0x20] sm:$0xff]  ;;  %v64_v36 = vld [vmem:[%s3830_s0 + $0x28] sm:$0xff] }
  0x1c   :  { %2438 = vmatprep.subr.bf16.mxu0 %v3245_v16  ;;  %v3305_v34 = vpack.c.bf16 %v235_v32, %v233_v31  ;;  %v65_v37 = vld [vmem:[%s3830_s0 + $0x30] sm:$0xff]  ;;  %v66_v38 = vld [vmem:[%s3830_s0 + $0x38] sm:$0xff]  ;;  %v71_v42 = vld [vmem:[%s3834_s4] sm:$0x3] }
  0x1d   :  { %v3350_v43 = vrot.slane %v71_v42, %v79_v41  ;;  %v3360_v49 = vrot.slane %v71_v42, %v75_v48  ;;  %v238_v57 = vld [vmem:[#allocation2 + $0x8] sm:$0xff]  ;;  %v240_v58 = vld [vmem:[#allocation2 + $0x18] sm:$0xff]  ;;  %v237_v59 = vld [vmem:[#allocation2] sm:$0xff] }
  0x1e   :  { %2320 = vmatmul.mubr.msk.f32.gmra.mrb[2].mxu0 %vm83_vm0, %v60_v21  ;;  %v3367_v60 = vpack.c.bf16 %v240_v58, %v238_v57  ;;  %v239_v61 = vld [vmem:[#allocation2 + $0x10] sm:$0xff]  ;;  %v242_v62 = vld [vmem:[#allocation2 + $0x28] sm:$0xff]  ;;  %v244_v63 = vld [vmem:[#allocation2 + $0x38] sm:$0xff] }
  0x1f   :  { %184 = vmatprep.mubr.f32.mxu0 %v3118_v0  ;;  %2440 = vmatpush1.bf16.msra.mxu0 %v3265_v22  ;;  %v3369_v1 = vpack.c.bf16 %v239_v61, %v237_v59  ;;  %v3371_v2 = vpack.c.bf16 %v244_v63, %v242_v62  ;;  %v241_v3 = vld [vmem:[#allocation2 + $0x20] sm:$0xff]  ;;  %v243_v4 = vld [vmem:[#allocation2 + $0x30] sm:$0xff]  ;;  %v246_v5 = vld [vmem:[#allocation2 + $0x48] sm:$0xff] }
  0x20   :  { %2442 = vmatprep.subr.bf16.mxu0 %v3268_v23  ;;  %2450 = vmatprep.subr.bf16.mxu1 %v3367_v60  ;;  %v248_v6 = vld [vmem:[#allocation2 + $0x58] sm:$0xff]  ;;  %v3375_v7 = vpack.c.bf16 %v243_v4, %v241_v3  ;;  %v245_v9 = vld [vmem:[#allocation2 + $0x40] sm:$0xff]  ;;  %v247_v10 = vld [vmem:[#allocation2 + $0x50] sm:$0xff] }
  0x21   :  { %2452 = vmatpush1.bf16.msra.mxu1 %v3369_v1  ;;  %v3378_v8 = vpack.c.bf16 %v248_v6, %v246_v5  ;;  %v250_v12 = vld [vmem:[#allocation2 + $0x68] sm:$0xff]  ;;  %v252_v13 = vld [vmem:[#allocation2 + $0x78] sm:$0xff]  ;;  %v3381_v15 = vpack.c.bf16 %v247_v10, %v245_v9  ;;  %v249_v18 = vld [vmem:[#allocation2 + $0x60] sm:$0xff] }
  0x22   :  { %2321 = vmatmul.mubr.msk.f32.gmra.mrb[4].mxu0 %vm83_vm0, %v61_v28  ;;  %2454 = vmatprep.subr.bf16.mxu1 %v3371_v2  ;;  %v3384_v17 = vpack.c.bf16 %v252_v13, %v250_v12  ;;  %v251_v19 = vld [vmem:[#allocation2 + $0x70] sm:$0xff]  ;;  %v254_v20 = vld [vmem:[#allocation2 + $0x88] sm:$0xff]  ;;  %v256_v21 = vld [vmem:[#allocation2 + $0x98] sm:$0xff] }
  0x23   :  { %190 = vmatprep.mubr.f32.mxu0 %v3118_v0  ;;  %2444 = vmatpush1.bf16.msra.mxu0 %v3288_v29  ;;  %v3387_v24 = vpack.c.bf16 %v251_v19, %v249_v18  ;;  %v3390_v25 = vpack.c.bf16 %v256_v21, %v254_v20  ;;  %v253_v26 = vld [vmem:[#allocation2 + $0x80] sm:$0xff]  ;;  %v255_v27 = vld [vmem:[#allocation2 + $0x90] sm:$0xff]  ;;  %v258_v28 = vld [vmem:[#allocation2 + $0xa8] sm:$0xff] }
  0x24   :  { %2446 = vmatprep.subr.bf16.mxu0 %v3291_v30  ;;  %v260_v31 = vld [vmem:[#allocation2 + $0xb8] sm:$0xff]  ;;  %v3393_v32 = vpack.c.bf16 %v255_v27, %v253_v26 }
  0x25   :  { %2456 = vmatpush1.bf16.msra.mxu1 %v3375_v7 }
  0x26   :  { %2322 = vmatmul.mubr.msk.f32.gmra.mrb[6].mxu0 %vm83_vm0, %v62_v33  ;;  %2458 = vmatprep.subr.bf16.mxu1 %v3378_v8  ;;  %v3396_v33 = vpack.c.bf16 %v260_v31, %v258_v28 }
  0x27   :  { %196 = vmatprep.mubr.f32.mxu0 %v3118_v0  ;;  %2448 = vmatpush1.bf16.msra.mxu0 %v3305_v34 }
  0x28   :  { %2482 = vmatprep.subr.bf16.mxu0 %v3231_v11 }
  0x29   :  { %2460 = vmatpush1.bf16.msra.mxu1 %v3381_v15 }
  0x2a   :  { %2323 = vmatmul.mubr.msk.f32.gmra.mrb[8].mxu0 %vm83_vm0, %v63_v35  ;;  %2462 = vmatprep.subr.bf16.mxu1 %v3384_v17  ;;  %v257_v35 = vld [vmem:[#allocation2 + $0xa0] sm:$0xff] }
  0x2b   :  { %202 = vmatprep.mubr.f32.mxu0 %v3118_v0 }
  0x2d   :  { %2464 = vmatpush1.bf16.msra.mxu1 %v3387_v24 }
  0x2e   :  { %2324 = vmatmul.mubr.msk.f32.gmra.mrb[10].mxu0 %vm83_vm0, %v64_v36  ;;  %2466 = vmatprep.subr.bf16.mxu1 %v3390_v25  ;;  %v259_v36 = vld [vmem:[#allocation2 + $0xb0] sm:$0xff] }
  0x2f   :  { %208 = vmatprep.mubr.f32.mxu0 %v3118_v0  ;;  %v3399_v39 = vpack.c.bf16 %v259_v36, %v257_v35 }
  0x31   :  { %2468 = vmatpush1.bf16.msra.mxu1 %v3393_v32 }
  0x32   :  { %2325 = vmatmul.mubr.msk.f32.gmra.mrb[12].mxu0 %vm83_vm0, %v65_v37  ;;  %v262_v37 = vld [vmem:[#allocation2 + $0xc8] sm:$0xff]  ;;  %2470 = vmatprep.subr.bf16.mxu1 %v3396_v33 }
  0x33   :  { %214 = vmatprep.mubr.f32.mxu0 %v3118_v0 }
  0x35   :  { %2472 = vmatpush1.bf16.msra.mxu1 %v3399_v39 }
  0x36   :  { %2326 = vmatmul.mubr.msk.f32.gmra.mrb[14].mxu0 %vm83_vm0, %v66_v38  ;;  %v264_v38 = vld [vmem:[#allocation2 + $0xd8] sm:$0xff] }
  0x37   :  { %349 = vmatprep.mubr.f32.mxu0 %v3118_v0  ;;  %v3402_v42 = vpack.c.bf16 %v264_v38, %v262_v37 }
  0x39   :  { %2474 = vmatprep.subr.bf16.mxu1 %v3402_v42 }
  0x3a   :  { %350 = vmatmul.mubr.f32.vlgmr.msra.gmra.mrb[0].mxu0 %v3118_v0 }
  0x3b   :  { %2484 = vmatpush1.bf16.msra.mxu0 %v3239_v14  ;;  %557 = vmatprep.mubr.f32.mxu0 %v3118_v0 }
  0x3c   :  { %2486 = vmatprep.subr.bf16.mxu0 %v3245_v16 }
  0x3f   :  { %2488 = vmatpush1.bf16.msra.mxu0 %v3265_v22 }
  0x40   :  { %2490 = vmatprep.subr.bf16.mxu0 %v3268_v23 }
  0x43   :  { %2492 = vmatpush1.bf16.msra.mxu0 %v3288_v29 }
  0x44   :  { %2494 = vmatprep.subr.bf16.mxu0 %v3291_v30 }
  0x47   :  { %2496 = vmatpush1.bf16.msra.mxu0 %v3305_v34 }
  0x48   :  { %2530 = vmatprep.subr.bf16.mxu0 %v3231_v11 }
 0x10d   :  { %v351_v44 = vpop.f32.mrb[0].mxu0 }
 0x10e   :  { %v353_v45 = vpop.f32.mrb[1].mxu0  ;;  %v2835_v50 = vadd.f32 %v351_v44, %v3360_v49  ;;  %v261_v44 = vld [vmem:[#allocation2 + $0xc0] sm:$0xff] }
 0x10f   :  { %v3353_v46 = vadd.f32 %v353_v45, %v3350_v43  ;;  %v263_v45 = vld [vmem:[#allocation2 + $0xd0] sm:$0xff] }
 0x110   :  { %v2327_v51 = vmul.f32 -1.442695, %v2835_v50  ;;  %v268_v50 = vld [vmem:[#allocation2 + $0xf8] sm:$0xff] }
 0x111   :  { %2875 = vtanh.f32 %v3353_v46  ;;  %v2328_v62 = vmul.f32 -1.442695, %v3353_v46  ;;  %v269_v46 = vld [vmem:[%s3836_s6] sm:$0x3] }
 0x112   :  { %2877 = vpow2.f32 %v2327_v51  ;;  %v3405_v51 = vpack.c.bf16 %v263_v45, %v261_v44 }
 0x114   :  { %2476 = vmatpush1.bf16.msra.mxu1 %v3405_v51 }
 0x11b   :  { %v2876_v47 = vpop.eup %2875 }
 0x11c   :  { %373 = vrot.lane.b32.xlu0 %v2876_v47, %s3119_s21  ;;  %v2878_v52 = vpop.eup %2877  ;;  %v266_v47 = vld [vmem:[#allocation2 + $0xe8] sm:$0xff] }
 0x11d   :  { %v364_v53 = vadd.f32 1.0, %v2878_v52  ;;  %v3408_v52 = vpack.c.bf16 %v268_v50, %v266_v47 }
 0x11f   :  { %2879 = vrcp.f32 %v364_v53  ;;  %v265_v53 = vld [vmem:[#allocation2 + $0xe0] sm:$0xff]  ;;  %2478 = vmatprep.subr.bf16.mxu1 %v3408_v52 }
 0x129   :  { %v3363_v54 = vpop.eup %2879 }
 0x12a   :  { %v371_v57 = vmul.f32 0.0, %v3363_v54 }
 0x18e   :  { %v374_v55 = vpop.permute.xlu0 %373 }
 0x18f   :  { %v376_v56 = vmul.f32 %v3363_v54, %v374_v55  ;;  %v267_v55 = vld [vmem:[#allocation2 + $0xf0] sm:$0xff]  ;;  %v3455_v54 = vrot.slane %v269_v46, %v79_v41  ;;  %v3463_v41 = vrot.slane %v269_v46, %v75_v48 }
 0x191   :  { %378 = vrot.lane.b32.xlu0 %v376_v56, %s3119_s21  ;;  %v3411_v56 = vpack.c.bf16 %v267_v55, %v265_v53 }
 0x193   :  { %2480 = vmatpush1.bf16.msra.mxu1 %v3411_v56 }
 0x194   :  { %2498 = vmatprep.subr.bf16.mxu1 %v3367_v60 }
 0x203   :  { %v379_v58 = vpop.permute.xlu0 %378 }
 0x204   :  { %v3417_v59 = vadd.f32 %v379_v58, %v371_v57 }
 0x206   :  { %2881 = vtanh.f32 %v3417_v59 }
 0x207   :  { %2883 = vpow2.f32 %v2328_v62 }
 0x210   :  { %v2882_v61 = vpop.eup %2881 }
 0x211   :  { %384 = vrot.lane.b32.xlu1 %v2882_v61, %s3119_s21  ;;  %v2884_v63 = vpop.eup %2883 }
 0x212   :  { %v365_v3 = vadd.f32 1.0, %v2884_v63 }
 0x214   :  { %2885 = vrcp.f32 %v365_v3 }
 0x21e   :  { %v2886_v4 = vpop.eup %2885 }
 0x283   :  { %v385_v5 = vpop.permute.xlu1 %384 }
 0x284   :  { %v387_v6 = vmul.f32 %v2886_v4, %v385_v5 }
 0x286   :  { %2329 = vmatmul.mubr.msk.f32.vlgmr.msra.gmra.mrb[0].mxu1 %vm281_vm1, %v387_v6  ;;  %2332 = vmatmul.mubr.msk.f32.vlgmr.msra.gmra.mrb[2].mxu0 %vm281_vm1, %v387_v6 }
 0x287   :  { %2532 = vmatpush1.bf16.msra.mxu0 %v3239_v14  ;;  %769 = vmatprep.mubr.f32.mxu0 %v3118_v0 }
 0x288   :  { %2534 = vmatprep.subr.bf16.mxu0 %v3245_v16  ;;  %2500 = vmatpush1.bf16.msra.mxu1 %v3369_v1 }
 0x289   :  { %2502 = vmatprep.subr.bf16.mxu1 %v3371_v2  ;;  %665 = vmatprep.mubr.f32.mxu1 %v3118_v0 }
 0x28b   :  { %2536 = vmatpush1.bf16.msra.mxu0 %v3265_v22 }
 0x28c   :  { %2538 = vmatprep.subr.bf16.mxu0 %v3268_v23  ;;  %2504 = vmatpush1.bf16.msra.mxu1 %v3375_v7 }
 0x28d   :  { %2506 = vmatprep.subr.bf16.mxu1 %v3378_v8 }
 0x28f   :  { %2540 = vmatpush1.bf16.msra.mxu0 %v3288_v29 }
 0x290   :  { %2542 = vmatprep.subr.bf16.mxu0 %v3291_v30  ;;  %2508 = vmatpush1.bf16.msra.mxu1 %v3381_v15 }
 0x291   :  { %2510 = vmatprep.subr.bf16.mxu1 %v3384_v17 }
 0x293   :  { %2544 = vmatpush1.bf16.msra.mxu0 %v3305_v34 }
 0x294   :  { %2512 = vmatpush1.bf16.msra.mxu1 %v3387_v24  ;;  %2578 = vmatprep.subr.bf16.mxu0 %v3231_v11 }
 0x295   :  { %2514 = vmatprep.subr.bf16.mxu1 %v3390_v25 }
 0x298   :  { %2516 = vmatpush1.bf16.msra.mxu1 %v3393_v32 }
 0x299   :  { %2518 = vmatprep.subr.bf16.mxu1 %v3396_v33 }
 0x29c   :  { %2520 = vmatpush1.bf16.msra.mxu1 %v3399_v39 }
 0x29d   :  { %2522 = vmatprep.subr.bf16.mxu1 %v3402_v42 }
 0x2a0   :  { %2524 = vmatpush1.bf16.msra.mxu1 %v3405_v51 }
 0x2a1   :  { %2526 = vmatprep.subr.bf16.mxu1 %v3408_v52 }
 0x2a4   :  { %2528 = vmatpush1.bf16.msra.mxu1 %v3411_v56 }
 0x2a5   :  { %2546 = vmatprep.subr.bf16.mxu1 %v3367_v60 }
 0x359   :  { %v455_v9 = vpop.f32.mrb[0].mxu1  ;;  %v559_v10 = vpop.f32.mrb[2].mxu0 }
 0x35a   :  { %v457_v12 = vpop.f32.mrb[1].mxu1  ;;  %v561_v13 = vpop.f32.mrb[3].mxu0  ;;  %v456_v26 = vadd.f32 %v455_v9, %v3463_v41  ;;  %v2837_v28 = vadd.f32 %v559_v10, %v3360_v49 }
 0x35b   :  { %v458_v18 = vadd.f32 %v457_v12, %v3455_v54  ;;  %v2838_v19 = vadd.f32 %v561_v13, %v3350_v43 }
 0x35c   :  { %v2330_v27 = vmul.f32 -1.442695, %v456_v26  ;;  %v2333_v31 = vmul.f32 -1.442695, %v2837_v28 }
 0x35d   :  { %2887 = vtanh.f32 %v458_v18  ;;  %v2331_v4 = vmul.f32 -1.442695, %v458_v18  ;;  %v2334_v5 = vmul.f32 -1.442695, %v2838_v19 }
 0x35e   :  { %2889 = vtanh.f32 %v2838_v19 }
 0x35f   :  { %2891 = vpow2.f32 %v2330_v27 }
 0x360   :  { %2893 = vpow2.f32 %v2333_v31 }
 0x367   :  { %v2888_v20 = vpop.eup %2887 }
 0x368   :  { %475 = vrot.lane.b32.xlu1 %v2888_v20, %s3119_s21  ;;  %v2890_v21 = vpop.eup %2889 }
 0x369   :  { %581 = vrot.lane.b32.xlu0 %v2890_v21, %s3119_s21  ;;  %v2892_v35 = vpop.eup %2891 }
 0x36a   :  { %v466_v36 = vadd.f32 1.0, %v2892_v35  ;;  %v2894_v37 = vpop.eup %2893 }
 0x36b   :  { %v572_v38 = vadd.f32 1.0, %v2894_v37 }
 0x36c   :  { %2895 = vrcp.f32 %v466_v36 }
 0x36d   :  { %2897 = vrcp.f32 %v572_v38 }
 0x376   :  { %v2896_v44 = vpop.eup %2895 }
 0x377   :  { %v2898_v40 = vpop.eup %2897  ;;  %v473_v53 = vmul.f32 0.0, %v2896_v44 }
 0x378   :  { %v579_v58 = vmul.f32 %v2898_v40, %v3417_v59 }
 0x3da   :  { %v476_v45 = vpop.permute.xlu1 %475 }
 0x3db   :  { %v478_v47 = vmul.f32 %v2896_v44, %v476_v45  ;;  %v582_v48 = vpop.permute.xlu0 %581 }
 0x3dc   :  { %v584_v50 = vmul.f32 %v2898_v40, %v582_v48 }
 0x3dd   :  { %480 = vrot.lane.b32.xlu1 %v478_v47, %s3119_s21 }
 0x3de   :  { %586 = vrot.lane.b32.xlu0 %v584_v50, %s3119_s21 }
 0x44f   :  { %v481_v55 = vpop.permute.xlu1 %480 }
 0x450   :  { %v3469_v57 = vadd.f32 %v481_v55, %v473_v53  ;;  %v587_v61 = vpop.permute.xlu0 %586 }
 0x451   :  { %v3473_v62 = vadd.f32 %v587_v61, %v579_v58 }
 0x452   :  { %2899 = vtanh.f32 %v3469_v57 }
 0x453   :  { %2901 = vtanh.f32 %v3473_v62 }
 0x454   :  { %2903 = vpow2.f32 %v2331_v4 }
 0x455   :  { %2905 = vpow2.f32 %v2334_v5 }
 0x45c   :  { %v2900_v63 = vpop.eup %2899 }
 0x45d   :  { %486 = vrot.lane.b32.xlu1 %v2900_v63, %s3119_s21  ;;  %v2902_v3 = vpop.eup %2901 }
 0x45e   :  { %592 = vrot.lane.b32.xlu0 %v2902_v3, %s3119_s21  ;;  %v2904_v6 = vpop.eup %2903 }
 0x45f   :  { %v467_v46 = vadd.f32 1.0, %v2904_v6  ;;  %v2906_v9 = vpop.eup %2905 }
 0x460   :  { %v573_v59 = vadd.f32 1.0, %v2906_v9 }
 0x461   :  { %2907 = vrcp.f32 %v467_v46 }
 0x462   :  { %2909 = vrcp.f32 %v573_v59 }
 0x46b   :  { %v2908_v10 = vpop.eup %2907 }
 0x46c   :  { %v2910_v20 = vpop.eup %2909 }
 0x4cf   :  { %v487_v12 = vpop.permute.xlu1 %486 }
 0x4d0   :  { %v489_v13 = vmul.f32 %v2908_v10, %v487_v12  ;;  %v593_v21 = vpop.permute.xlu0 %592 }
 0x4d1   :  { %v595_v26 = vmul.f32 %v2910_v20, %v593_v21 }
 0x4d2   :  { %597 = vrot.lane.b32.xlu1 %v489_v13, %s3119_s21 }
 0x4d3   :  { %2337 = vmatmul.mubr.msk.f32.vlgmr.msra.gmra.mrb[4].mxu0 %vm281_vm1, %v595_v26 }
 0x4d4   :  { %2580 = vmatpush1.bf16.msra.mxu0 %v3239_v14  ;;  %981 = vmatprep.mubr.f32.mxu0 %v3118_v0 }
 0x4d5   :  { %2582 = vmatprep.subr.bf16.mxu0 %v3245_v16 }
 0x4d8   :  { %2584 = vmatpush1.bf16.msra.mxu0 %v3265_v22 }
 0x4d9   :  { %2586 = vmatprep.subr.bf16.mxu0 %v3268_v23 }
 0x4dc   :  { %2588 = vmatpush1.bf16.msra.mxu0 %v3288_v29 }
 0x4dd   :  { %2590 = vmatprep.subr.bf16.mxu0 %v3291_v30 }
 0x4e0   :  { %2592 = vmatpush1.bf16.msra.mxu0 %v3305_v34 }
 0x4e1   :  { %2594 = vmatprep.subr.bf16.mxu0 %v3367_v60 }
 0x544   :  { %v598_v18 = vpop.permute.xlu1 %597 }
 0x545   :  { %v600_v19 = vsel %vm281_vm1, %v595_v26, %v598_v18 }
 0x546   :  { %666 = vmatmul.mubr.f32.vlgmr.msra.gmra.mrb[2].mxu1 %v600_v19 }
 0x547   :  { %2548 = vmatpush1.bf16.msra.mxu1 %v3369_v1  ;;  %877 = vmatprep.mubr.f32.mxu1 %v3118_v0 }
 0x548   :  { %2550 = vmatprep.subr.bf16.mxu1 %v3371_v2 }
 0x54b   :  { %2552 = vmatpush1.bf16.msra.mxu1 %v3375_v7 }
 0x54c   :  { %2554 = vmatprep.subr.bf16.mxu1 %v3378_v8 }
 0x54f   :  { %2556 = vmatpush1.bf16.msra.mxu1 %v3381_v15 }
 0x550   :  { %2558 = vmatprep.subr.bf16.mxu1 %v3384_v17 }
 0x553   :  { %2560 = vmatpush1.bf16.msra.mxu1 %v3387_v24 }
 0x554   :  { %2562 = vmatprep.subr.bf16.mxu1 %v3390_v25 }
 0x557   :  { %2564 = vmatpush1.bf16.msra.mxu1 %v3393_v32 }
 0x558   :  { %2566 = vmatprep.subr.bf16.mxu1 %v3396_v33 }
 0x55b   :  { %2568 = vmatpush1.bf16.msra.mxu1 %v3399_v39 }
 0x55c   :  { %2570 = vmatprep.subr.bf16.mxu1 %v3402_v42 }
 0x55f   :  { %2572 = vmatpush1.bf16.msra.mxu1 %v3405_v51 }
 0x560   :  { %2574 = vmatprep.subr.bf16.mxu1 %v3408_v52 }
 0x563   :  { %2576 = vmatpush1.bf16.msra.mxu1 %v3411_v56 }
 0x564   :  { %2642 = vmatprep.subr.bf16.mxu1 %v3367_v60 }
 0x5a6   :  { %v771_v27 = vpop.f32.mrb[4].mxu0 }
 0x5a7   :  { %v773_v28 = vpop.f32.mrb[5].mxu0  ;;  %v2839_v36 = vadd.f32 %v771_v27, %v3360_v49 }
 0x5a8   :  { %v2840_v31 = vadd.f32 %v773_v28, %v3350_v43 }
 0x5a9   :  { %v2338_v37 = vmul.f32 -1.442695, %v2839_v36 }
 0x5aa   :  { %2911 = vtanh.f32 %v2840_v31  ;;  %v2339_v12 = vmul.f32 -1.442695, %v2840_v31 }
 0x5ab   :  { %2913 = vpow2.f32 %v2338_v37 }
 0x5b4   :  { %v2912_v35 = vpop.eup %2911 }
 0x5b5   :  { %793 = vrot.lane.b32.xlu1 %v2912_v35, %s3119_s21  ;;  %v2914_v44 = vpop.eup %2913 }
 0x5b6   :  { %v784_v40 = vadd.f32 1.0, %v2914_v44 }
 0x619   :  { %v667_v38 = vpop.f32.mrb[2].mxu1 }
 0x61a   :  { %v669_v45 = vpop.f32.mrb[3].mxu1  ;;  %v668_v58 = vadd.f32 %v667_v38, %v3463_v41 }
 0x61b   :  { %v670_v47 = vadd.f32 %v669_v45, %v3455_v54 }
 0x61c   :  { %v2335_v61 = vmul.f32 -1.442695, %v668_v58 }
 0x61d   :  { %2915 = vtanh.f32 %v670_v47 }
 0x61e   :  { %2917 = vrcp.f32 %v784_v40 }
 0x61f   :  { %2919 = vpow2.f32 %v2335_v61 }
 0x627   :  { %v2916_v48 = vpop.eup %2915  ;;  %v794_v53 = vpop.permute.xlu1 %793 }
 0x628   :  { %687 = vrot.lane.b32.xlu0 %v2916_v48, %s3119_s21  ;;  %v2918_v50 = vpop.eup %2917 }
 0x629   :  { %v796_v55 = vmul.f32 %v2918_v50, %v794_v53  ;;  %v2920_v63 = vpop.eup %2919  ;;  %v791_v46 = vmul.f32 %v2918_v50, %v3473_v62 }
 0x62a   :  { %v678_v3 = vadd.f32 1.0, %v2920_v63 }
 0x62b   :  { %798 = vrot.lane.b32.xlu1 %v796_v55, %s3119_s21 }
 0x62c   :  { %2921 = vrcp.f32 %v678_v3 }
 0x636   :  { %v2922_v4 = vpop.eup %2921 }
 0x637   :  { %v685_v13 = vmul.f32 %v2922_v4, %v3469_v57  ;;  %v2336_v57 = vmul.f32 -1.442695, %v670_v47 }
 0x69a   :  { %v688_v5 = vpop.permute.xlu0 %687 }
 0x69b   :  { %v690_v6 = vmul.f32 %v2922_v4, %v688_v5 }
 0x69d   :  { %692 = vrot.lane.b32.xlu0 %v690_v6, %s3119_s21  ;;  %v799_v9 = vpop.permute.xlu1 %798 }
 0x69e   :  { %v3516_v59 = vadd.f32 %v799_v9, %v791_v46 }
 0x6a0   :  { %2923 = vtanh.f32 %v3516_v59 }
 0x6a1   :  { %2925 = vpow2.f32 %v2339_v12 }
 0x6aa   :  { %v2924_v10 = vpop.eup %2923 }
 0x6ab   :  { %804 = vrot.lane.b32.xlu1 %v2924_v10, %s3119_s21  ;;  %v2926_v20 = vpop.eup %2925 }
 0x6ac   :  { %v785_v18 = vadd.f32 1.0, %v2926_v20 }
 0x70f   :  { %v693_v21 = vpop.permute.xlu0 %692 }
 0x710   :  { %v3521_v26 = vadd.f32 %v693_v21, %v685_v13 }
 0x712   :  { %2927 = vtanh.f32 %v3521_v26 }
 0x713   :  { %2929 = vrcp.f32 %v785_v18 }
 0x714   :  { %2931 = vpow2.f32 %v2336_v57 }
 0x71c   :  { %v2928_v62 = vpop.eup %2927 }
 0x71d   :  { %698 = vrot.lane.b32.xlu0 %v2928_v62, %s3119_s21  ;;  %v2930_v19 = vpop.eup %2929  ;;  %v805_v27 = vpop.permute.xlu1 %804 }
 0x71e   :  { %v807_v28 = vmul.f32 %v2930_v19, %v805_v27  ;;  %v2932_v31 = vpop.eup %2931 }
 0x71f   :  { %v679_v35 = vadd.f32 1.0, %v2932_v31 }
 0x720   :  { %2342 = vmatmul.mubr.msk.f32.vlgmr.msra.gmra.mrb[6].mxu0 %vm281_vm1, %v807_v28 }
 0x721   :  { %2596 = vmatpush1.bf16.msra.mxu0 %v3369_v1  ;;  %1089 = vmatprep.mubr.f32.mxu0 %v3118_v0  ;;  %2933 = vrcp.f32 %v679_v35 }
 0x722   :  { %2598 = vmatprep.subr.bf16.mxu0 %v3371_v2 }
 0x725   :  { %2600 = vmatpush1.bf16.msra.mxu0 %v3375_v7 }
 0x726   :  { %2602 = vmatprep.subr.bf16.mxu0 %v3378_v8 }
 0x729   :  { %2604 = vmatpush1.bf16.msra.mxu0 %v3381_v15 }
 0x72a   :  { %2606 = vmatprep.subr.bf16.mxu0 %v3384_v17 }
 0x72b   :  { %v2934_v36 = vpop.eup %2933 }
 0x72d   :  { %2608 = vmatpush1.bf16.msra.mxu0 %v3387_v24 }
 0x72e   :  { %2610 = vmatprep.subr.bf16.mxu0 %v3390_v25 }
 0x731   :  { %2612 = vmatpush1.bf16.msra.mxu0 %v3393_v32 }
 0x732   :  { %2614 = vmatprep.subr.bf16.mxu0 %v3396_v33 }
 0x735   :  { %2616 = vmatpush1.bf16.msra.mxu0 %v3399_v39 }
 0x736   :  { %2618 = vmatprep.subr.bf16.mxu0 %v3402_v42 }
 0x739   :  { %2620 = vmatpush1.bf16.msra.mxu0 %v3405_v51 }
 0x73a   :  { %2622 = vmatprep.subr.bf16.mxu0 %v3408_v52 }
 0x73d   :  { %2624 = vmatpush1.bf16.msra.mxu0 %v3411_v56 }
 0x73e   :  { %2626 = vmatprep.subr.bf16.mxu0 %v3231_v11 }
 0x78f   :  { %v699_v37 = vpop.permute.xlu0 %698 }
 0x790   :  { %v701_v38 = vmul.f32 %v2934_v36, %v699_v37 }
 0x792   :  { %809 = vrot.lane.b32.xlu0 %v701_v38, %s3119_s21 }
 0x7f3   :  { %v983_v44 = vpop.f32.mrb[6].mxu0 }
 0x7f4   :  { %v985_v45 = vpop.f32.mrb[7].mxu0  ;;  %v2841_v53 = vadd.f32 %v983_v44, %v3360_v49 }
 0x7f5   :  { %v3545_v40 = vadd.f32 %v985_v45, %v3350_v43 }
 0x7f6   :  { %v2343_v55 = vmul.f32 -1.442695, %v2841_v53 }
 0x7f7   :  { %2935 = vtanh.f32 %v3545_v40 }
 0x7f8   :  { %2937 = vpow2.f32 %v2343_v55 }
 0x801   :  { %v2936_v48 = vpop.eup %2935 }
 0x802   :  { %1005 = vrot.lane.b32.xlu0 %v2936_v48, %s3119_s21  ;;  %v2938_v58 = vpop.eup %2937 }
 0x803   :  { %v996_v61 = vadd.f32 1.0, %v2938_v58 }
 0x804   :  { %v810_v50 = vpop.permute.xlu0 %809 }
 0x805   :  { %v812_v47 = vsel %vm281_vm1, %v807_v28, %v810_v50  ;;  %2939 = vrcp.f32 %v996_v61 }
 0x806   :  { %878 = vmatmul.mubr.f32.vlgmr.msra.gmra.mrb[4].mxu1 %v812_v47 }
 0x807   :  { %2644 = vmatpush1.bf16.msra.mxu1 %v3369_v1  ;;  %1301 = vmatprep.mubr.f32.mxu1 %v3118_v0 }
 0x808   :  { %2646 = vmatprep.subr.bf16.mxu1 %v3371_v2 }
 0x80b   :  { %2648 = vmatpush1.bf16.msra.mxu1 %v3375_v7 }
 0x80c   :  { %2650 = vmatprep.subr.bf16.mxu1 %v3378_v8 }
 0x80f   :  { %2652 = vmatpush1.bf16.msra.mxu1 %v3381_v15  ;;  %v2940_v63 = vpop.eup %2939 }
 0x810   :  { %2654 = vmatprep.subr.bf16.mxu1 %v3384_v17  ;;  %v1003_v10 = vmul.f32 %v2940_v63, %v3516_v59 }
 0x813   :  { %2656 = vmatpush1.bf16.msra.mxu1 %v3387_v24 }
 0x814   :  { %2658 = vmatprep.subr.bf16.mxu1 %v3390_v25 }
 0x817   :  { %2660 = vmatpush1.bf16.msra.mxu1 %v3393_v32 }
 0x818   :  { %2662 = vmatprep.subr.bf16.mxu1 %v3396_v33 }
 0x81b   :  { %2664 = vmatpush1.bf16.msra.mxu1 %v3399_v39 }
 0x81c   :  { %2666 = vmatprep.subr.bf16.mxu1 %v3402_v42 }
 0x81f   :  { %2668 = vmatpush1.bf16.msra.mxu1 %v3405_v51 }
 0x820   :  { %2670 = vmatprep.subr.bf16.mxu1 %v3408_v52 }
 0x823   :  { %2672 = vmatpush1.bf16.msra.mxu1 %v3411_v56 }
 0x824   :  { %2690 = vmatprep.subr.bf16.mxu1 %v3367_v60 }
 0x874   :  { %v1006_v3 = vpop.permute.xlu0 %1005 }
 0x875   :  { %v1008_v4 = vmul.f32 %v2940_v63, %v1006_v3 }
 0x877   :  { %1010 = vrot.lane.b32.xlu0 %v1008_v4, %s3119_s21 }
 0x8d9   :  { %v879_v5 = vpop.f32.mrb[4].mxu1 }
 0x8da   :  { %v881_v6 = vpop.f32.mrb[5].mxu1  ;;  %v880_v21 = vadd.f32 %v879_v5, %v3463_v41 }
 0x8db   :  { %v882_v46 = vadd.f32 %v881_v6, %v3455_v54 }
 0x8dc   :  { %v2340_v18 = vmul.f32 -1.442695, %v880_v21 }
 0x8dd   :  { %2941 = vtanh.f32 %v882_v46  ;;  %v2341_v37 = vmul.f32 -1.442695, %v882_v46 }
 0x8e7   :  { %v2942_v9 = vpop.eup %2941 }
 0x8e8   :  { %899 = vrot.lane.b32.xlu1 %v2942_v9, %s3119_s21 }
 0x8e9   :  { %v1011_v12 = vpop.permute.xlu0 %1010 }
 0x8ea   :  { %v3572_v13 = vadd.f32 %v1011_v12, %v1003_v10 }
 0x8ec   :  { %2943 = vtanh.f32 %v3572_v13 }
 0x8ed   :  { %2945 = vpow2.f32 %v2340_v18 }
 0x8f6   :  { %v2944_v20 = vpop.eup %2943 }
 0x8f7   :  { %1016 = vrot.lane.b32.xlu0 %v2944_v20, %s3119_s21  ;;  %v2946_v62 = vpop.eup %2945 }
 0x8f8   :  { %v890_v19 = vadd.f32 1.0, %v2946_v62 }
 0x8fa   :  { %2947 = vrcp.f32 %v890_v19 }
 0x904   :  { %v2948_v27 = vpop.eup %2947 }
 0x905   :  { %v897_v59 = vmul.f32 %v2948_v27, %v3521_v26  ;;  %v2344_v26 = vmul.f32 -1.442695, %v3545_v40 }
 0x95a   :  { %v900_v28 = vpop.permute.xlu1 %899 }
 0x95b   :  { %v902_v57 = vmul.f32 %v2948_v27, %v900_v28 }
 0x95d   :  { %904 = vrot.lane.b32.xlu1 %v902_v57, %s3119_s21 }
 0x969   :  { %v1017_v55 = vpop.permute.xlu0 %1016 }
 0x9cf   :  { %v905_v31 = vpop.permute.xlu1 %904 }
 0x9d0   :  { %v3579_v35 = vadd.f32 %v905_v31, %v897_v59 }
 0x9d2   :  { %2949 = vtanh.f32 %v3579_v35 }
 0x9d3   :  { %2951 = vpow2.f32 %v2341_v37 }
 0x9dc   :  { %v2950_v36 = vpop.eup %2949 }
 0x9dd   :  { %910 = vrot.lane.b32.xlu1 %v2950_v36, %s3119_s21  ;;  %v2952_v38 = vpop.eup %2951 }
 0x9de   :  { %v891_v44 = vadd.f32 1.0, %v2952_v38 }
 0x9e0   :  { %2953 = vrcp.f32 %v891_v44 }
 0x9e1   :  { %2955 = vpow2.f32 %v2344_v26 }
 0x9ea   :  { %v2954_v45 = vpop.eup %2953 }
 0x9eb   :  { %v2956_v47 = vpop.eup %2955 }
 0x9ec   :  { %v997_v53 = vadd.f32 1.0, %v2956_v47 }
 0x9ee   :  { %2957 = vrcp.f32 %v997_v53 }
 0x9f8   :  { %v2958_v58 = vpop.eup %2957 }
 0x9f9   :  { %v1019_v61 = vmul.f32 %v2958_v58, %v1017_v55 }
 0xa4f   :  { %v911_v48 = vpop.permute.xlu1 %910 }
 0xa50   :  { %v913_v50 = vmul.f32 %v2954_v45, %v911_v48 }
 0xa52   :  { %1021 = vrot.lane.b32.xlu1 %v913_v50, %s3119_s21 }
 0xac4   :  { %v1022_v63 = vpop.permute.xlu1 %1021 }
 0xac5   :  { %v1024_v3 = vsel %vm281_vm1, %v1019_v61, %v1022_v63 }
 0xac6   :  { %1090 = vmatmul.mubr.f32.vlgmr.msra.gmra.mrb[16].mxu0 %v1024_v3 }
 0xac7   :  { %2628 = vmatpush1.bf16.msra.mxu0 %v3239_v14  ;;  %1193 = vmatprep.mubr.f32.mxu0 %v3118_v0 }
 0xac8   :  { %2630 = vmatprep.subr.bf16.mxu0 %v3245_v16 }
 0xacb   :  { %2632 = vmatpush1.bf16.msra.mxu0 %v3265_v22 }
 0xacc   :  { %2634 = vmatprep.subr.bf16.mxu0 %v3268_v23 }
 0xacf   :  { %2636 = vmatpush1.bf16.msra.mxu0 %v3288_v29 }
 0xad0   :  { %2638 = vmatprep.subr.bf16.mxu0 %v3291_v30 }
 0xad3   :  { %2640 = vmatpush1.bf16.msra.mxu0 %v3305_v34 }
 0xad4   :  { %2674 = vmatprep.subr.bf16.mxu0 %v3231_v11 }
 0xad6   :  { %2347 = vmatmul.mubr.msk.f32.vlgmr.msra.gmra.mrb[8].mxu0 %vm281_vm1, %v1019_v61 }
 0xad7   :  { %2676 = vmatpush1.bf16.msra.mxu0 %v3239_v14  ;;  %1405 = vmatprep.mubr.f32.mxu0 %v3118_v0 }
 0xad8   :  { %2678 = vmatprep.subr.bf16.mxu0 %v3245_v16 }
 0xadb   :  { %2680 = vmatpush1.bf16.msra.mxu0 %v3265_v22 }
 0xadc   :  { %2682 = vmatprep.subr.bf16.mxu0 %v3268_v23 }
 0xadf   :  { %2684 = vmatpush1.bf16.msra.mxu0 %v3288_v29 }
 0xae0   :  { %2686 = vmatprep.subr.bf16.mxu0 %v3291_v30 }
 0xae3   :  { %2688 = vmatpush1.bf16.msra.mxu0 %v3305_v34 }
 0xae4   :  { %2722 = vmatprep.subr.bf16.mxu0 %v3231_v11 }
 0xb99   :  { %v1091_v40 = vpop.f32.mrb[16].mxu0 }
 0xb9a   :  { %v1093_v4 = vpop.f32.mrb[17].mxu0  ;;  %v1092_v20 = vadd.f32 %v1091_v40, %v3463_v41 }
 0xb9b   :  { %v1094_v5 = vadd.f32 %v1093_v4, %v3455_v54 }
 0xb9c   :  { %v2345_v21 = vmul.f32 -1.442695, %v1092_v20 }
 0xb9d   :  { %2959 = vtanh.f32 %v1094_v5  ;;  %v2346_v61 = vmul.f32 -1.442695, %v1094_v5 }
 0xba7   :  { %v2960_v6 = vpop.eup %2959 }
 0xba8   :  { %1111 = vrot.lane.b32.xlu0 %v2960_v6, %s3119_s21 }
 0xba9   :  { %v1195_v46 = vpop.f32.mrb[8].mxu0 }
 0xbaa   :  { %v1197_v9 = vpop.f32.mrb[9].mxu0  ;;  %v2843_v18 = vadd.f32 %v1195_v46, %v3360_v49 }
 0xbab   :  { %v2844_v10 = vadd.f32 %v1197_v9, %v3350_v43 }
 0xbac   :  { %v2348_v19 = vmul.f32 -1.442695, %v2843_v18 }
 0xbad   :  { %2961 = vtanh.f32 %v2844_v10  ;;  %v2349_v63 = vmul.f32 -1.442695, %v2844_v10 }
 0xbae   :  { %2963 = vpow2.f32 %v2345_v21 }
 0xbaf   :  { %2965 = vpow2.f32 %v2348_v19 }
 0xbb7   :  { %v2962_v12 = vpop.eup %2961 }
 0xbb8   :  { %1217 = vrot.lane.b32.xlu1 %v2962_v12, %s3119_s21  ;;  %v2964_v62 = vpop.eup %2963 }
 0xbb9   :  { %v1102_v27 = vadd.f32 1.0, %v2964_v62  ;;  %v2966_v28 = vpop.eup %2965 }
 0xbba   :  { %v1208_v36 = vadd.f32 1.0, %v2966_v28 }
 0xbbb   :  { %2967 = vrcp.f32 %v1102_v27 }
 0xbbc   :  { %2969 = vrcp.f32 %v1208_v36 }
 0xbc5   :  { %v2968_v57 = vpop.eup %2967 }
 0xbc6   :  { %v2970_v37 = vpop.eup %2969  ;;  %v1109_v45 = vmul.f32 %v2968_v57, %v3579_v35 }
 0xbc7   :  { %v1215_v47 = vmul.f32 %v2970_v37, %v3572_v13 }
 0xc1a   :  { %v1112_v59 = vpop.permute.xlu0 %1111 }
 0xc1b   :  { %v1114_v31 = vmul.f32 %v2968_v57, %v1112_v59 }
 0xc1d   :  { %1116 = vrot.lane.b32.xlu0 %v1114_v31, %s3119_s21 }
 0xc2a   :  { %v1218_v38 = vpop.permute.xlu1 %1217 }
 0xc2b   :  { %v1220_v44 = vmul.f32 %v2970_v37, %v1218_v38 }
 0xc2d   :  { %1222 = vrot.lane.b32.xlu1 %v1220_v44, %s3119_s21 }
 0xc8f   :  { %v1117_v48 = vpop.permute.xlu0 %1116 }
 0xc90   :  { %v3614_v50 = vadd.f32 %v1117_v48, %v1109_v45 }
 0xc92   :  { %2971 = vtanh.f32 %v3614_v50 }
 0xc9c   :  { %v2972_v26 = vpop.eup %2971 }
 0xc9d   :  { %1122 = vrot.lane.b32.xlu0 %v2972_v26, %s3119_s21 }
 0xc9f   :  { %v1223_v53 = vpop.permute.xlu1 %1222 }
 0xca0   :  { %v3619_v55 = vadd.f32 %v1223_v53, %v1215_v47 }
 0xca2   :  { %2973 = vtanh.f32 %v3619_v55 }
 0xca3   :  { %2975 = vpow2.f32 %v2346_v61 }
 0xca4   :  { %2977 = vpow2.f32 %v2349_v63 }
 0xcac   :  { %v2974_v58 = vpop.eup %2973 }
 0xcad   :  { %1228 = vrot.lane.b32.xlu1 %v2974_v58, %s3119_s21  ;;  %v2976_v35 = vpop.eup %2975 }
 0xcae   :  { %v1103_v3 = vadd.f32 1.0, %v2976_v35  ;;  %v2978_v40 = vpop.eup %2977 }
 0xcaf   :  { %v1209_v13 = vadd.f32 1.0, %v2978_v40 }
 0xcb0   :  { %2979 = vrcp.f32 %v1103_v3 }
 0xcb1   :  { %2981 = vrcp.f32 %v1209_v13 }
 0xcba   :  { %v2980_v4 = vpop.eup %2979 }
 0xcbb   :  { %v2982_v9 = vpop.eup %2981 }
 0xd0f   :  { %v1123_v6 = vpop.permute.xlu0 %1122 }
 0xd10   :  { %v1125_v46 = vmul.f32 %v2980_v4, %v1123_v6 }
 0xd12   :  { %1233 = vrot.lane.b32.xlu0 %v1125_v46, %s3119_s21 }
 0xd1f   :  { %v1229_v12 = vpop.permute.xlu1 %1228 }
 0xd20   :  { %v1231_v20 = vmul.f32 %v2982_v9, %v1229_v12 }
 0xd22   :  { %2352 = vmatmul.mubr.msk.f32.vlgmr.msra.gmra.mrb[10].mxu0 %vm281_vm1, %v1231_v20 }
 0xd23   :  { %2724 = vmatpush1.bf16.msra.mxu0 %v3239_v14  ;;  %1617 = vmatprep.mubr.f32.mxu0 %v3118_v0 }
 0xd24   :  { %2726 = vmatprep.subr.bf16.mxu0 %v3245_v16 }
 0xd27   :  { %2728 = vmatpush1.bf16.msra.mxu0 %v3265_v22 }
 0xd28   :  { %2730 = vmatprep.subr.bf16.mxu0 %v3268_v23 }
 0xd2b   :  { %2732 = vmatpush1.bf16.msra.mxu0 %v3288_v29 }
 0xd2c   :  { %2734 = vmatprep.subr.bf16.mxu0 %v3291_v30 }
 0xd2f   :  { %2736 = vmatpush1.bf16.msra.mxu0 %v3305_v34 }
 0xd30   :  { %2770 = vmatprep.subr.bf16.mxu0 %v3231_v11 }
 0xd84   :  { %v1234_v5 = vpop.permute.xlu0 %1233 }
 0xd85   :  { %v1236_v10 = vsel %vm281_vm1, %v1231_v20, %v1234_v5 }
 0xd86   :  { %1302 = vmatmul.mubr.f32.vlgmr.msra.gmra.mrb[6].mxu1 %v1236_v10 }
 0xd87   :  { %2692 = vmatpush1.bf16.msra.mxu1 %v3369_v1  ;;  %1513 = vmatprep.mubr.f32.mxu1 %v3118_v0 }
 0xd88   :  { %2694 = vmatprep.subr.bf16.mxu1 %v3371_v2 }
 0xd8b   :  { %2696 = vmatpush1.bf16.msra.mxu1 %v3375_v7 }
 0xd8c   :  { %2698 = vmatprep.subr.bf16.mxu1 %v3378_v8 }
 0xd8f   :  { %2700 = vmatpush1.bf16.msra.mxu1 %v3381_v15 }
 0xd90   :  { %2702 = vmatprep.subr.bf16.mxu1 %v3384_v17 }
 0xd93   :  { %2704 = vmatpush1.bf16.msra.mxu1 %v3387_v24 }
 0xd94   :  { %2706 = vmatprep.subr.bf16.mxu1 %v3390_v25 }
 0xd97   :  { %2708 = vmatpush1.bf16.msra.mxu1 %v3393_v32 }
 0xd98   :  { %2710 = vmatprep.subr.bf16.mxu1 %v3396_v33 }
 0xd9b   :  { %2712 = vmatpush1.bf16.msra.mxu1 %v3399_v39 }
 0xd9c   :  { %2714 = vmatprep.subr.bf16.mxu1 %v3402_v42 }
 0xd9f   :  { %2716 = vmatpush1.bf16.msra.mxu1 %v3405_v51 }
 0xda0   :  { %2718 = vmatprep.subr.bf16.mxu1 %v3408_v52 }
 0xda3   :  { %2720 = vmatpush1.bf16.msra.mxu1 %v3411_v56 }
 0xda4   :  { %2738 = vmatprep.subr.bf16.mxu1 %v3367_v60 }
 0xdf5   :  { %v1407_v11 = vpop.f32.mrb[10].mxu0 }
 0xdf6   :  { %v1409_v21 = vpop.f32.mrb[11].mxu0  ;;  %v2845_v19 = vadd.f32 %v1407_v11, %v3360_v49 }
 0xdf7   :  { %v2846_v18 = vadd.f32 %v1409_v21, %v3350_v43 }
 0xdf8   :  { %v2353_v27 = vmul.f32 -1.442695, %v2845_v19 }
 0xdf9   :  { %2983 = vtanh.f32 %v2846_v18  ;;  %v2354_v6 = vmul.f32 -1.442695, %v2846_v18 }
 0xdfa   :  { %2985 = vpow2.f32 %v2353_v27 }
 0xe03   :  { %v2984_v62 = vpop.eup %2983 }
 0xe04   :  { %1429 = vrot.lane.b32.xlu0 %v2984_v62, %s3119_s21  ;;  %v2986_v31 = vpop.eup %2985 }
 0xe05   :  { %v1420_v37 = vadd.f32 1.0, %v2986_v31 }
 0xe59   :  { %v1303_v28 = vpop.f32.mrb[6].mxu1 }
 0xe5a   :  { %v1305_v57 = vpop.f32.mrb[7].mxu1  ;;  %v1304_v48 = vadd.f32 %v1303_v28, %v3463_v41 }
 0xe5b   :  { %v1306_v59 = vadd.f32 %v1305_v57, %v3455_v54 }
 0xe5c   :  { %v2350_v26 = vmul.f32 -1.442695, %v1304_v48 }
 0xe5d   :  { %2987 = vtanh.f32 %v1306_v59 }
 0xe5e   :  { %2989 = vrcp.f32 %v1420_v37 }
 0xe5f   :  { %2991 = vpow2.f32 %v2350_v26 }
 0xe67   :  { %v2988_v36 = vpop.eup %2987 }
 0xe68   :  { %1323 = vrot.lane.b32.xlu1 %v2988_v36, %s3119_s21  ;;  %v2990_v38 = vpop.eup %2989 }
 0xe69   :  { %v2992_v47 = vpop.eup %2991  ;;  %v1427_v63 = vmul.f32 %v2990_v38, %v3619_v55 }
 0xe6a   :  { %v1314_v53 = vadd.f32 1.0, %v2992_v47 }
 0xe6c   :  { %2993 = vrcp.f32 %v1314_v53 }
 0xe76   :  { %v1430_v44 = vpop.permute.xlu0 %1429  ;;  %v2994_v58 = vpop.eup %2993 }
 0xe77   :  { %v1432_v45 = vmul.f32 %v2990_v38, %v1430_v44  ;;  %v1321_v46 = vmul.f32 %v2994_v58, %v3614_v50  ;;  %v2351_v50 = vmul.f32 -1.442695, %v1306_v59 }
 0xe79   :  { %1434 = vrot.lane.b32.xlu0 %v1432_v45, %s3119_s21 }
 0xeda   :  { %v1324_v61 = vpop.permute.xlu1 %1323 }
 0xedb   :  { %v1326_v35 = vmul.f32 %v2994_v58, %v1324_v61 }
 0xedd   :  { %1328 = vrot.lane.b32.xlu1 %v1326_v35, %s3119_s21 }
 0xeeb   :  { %v1435_v3 = vpop.permute.xlu0 %1434 }
 0xeec   :  { %v3661_v40 = vadd.f32 %v1435_v3, %v1427_v63 }
 0xeee   :  { %2995 = vtanh.f32 %v3661_v40 }
 0xeef   :  { %2997 = vpow2.f32 %v2354_v6 }
 0xef8   :  { %v2996_v4 = vpop.eup %2995 }
 0xef9   :  { %1440 = vrot.lane.b32.xlu0 %v2996_v4, %s3119_s21  ;;  %v2998_v12 = vpop.eup %2997 }
 0xefa   :  { %v1421_v55 = vadd.f32 1.0, %v2998_v12 }
 0xf4f   :  { %v1329_v13 = vpop.permute.xlu1 %1328 }
 0xf50   :  { %v3666_v9 = vadd.f32 %v1329_v13, %v1321_v46 }
 0xf52   :  { %2999 = vtanh.f32 %v3666_v9 }
 0xf53   :  { %3001 = vrcp.f32 %v1421_v55 }
 0xf54   :  { %3003 = vpow2.f32 %v2351_v50 }
 0xf5c   :  { %v3000_v20 = vpop.eup %2999 }
 0xf5d   :  { %1334 = vrot.lane.b32.xlu1 %v3000_v20, %s3119_s21  ;;  %v3002_v5 = vpop.eup %3001 }
 0xf5e   :  { %v3004_v21 = vpop.eup %3003 }
 0xf6b   :  { %v1441_v10 = vpop.permute.xlu0 %1440 }
 0xf6c   :  { %v1443_v11 = vmul.f32 %v3002_v5, %v1441_v10 }
 0xf6e   :  { %2357 = vmatmul.mubr.msk.f32.vlgmr.msra.gmra.mrb[12].mxu0 %vm281_vm1, %v1443_v11 }
 0xf6f   :  { %2772 = vmatpush1.bf16.msra.mxu0 %v3239_v14  ;;  %1829 = vmatprep.mubr.f32.mxu0 %v3118_v0  ;;  %v1315_v14 = vadd.f32 1.0, %v3004_v21 }
 0xf70   :  { %2774 = vmatprep.subr.bf16.mxu0 %v3245_v16 }
 0xf71   :  { %3005 = vrcp.f32 %v1315_v14 }
 0xf73   :  { %2776 = vmatpush1.bf16.msra.mxu0 %v3265_v22 }
 0xf74   :  { %2778 = vmatprep.subr.bf16.mxu0 %v3268_v23 }
 0xf77   :  { %2780 = vmatpush1.bf16.msra.mxu0 %v3288_v29 }
 0xf78   :  { %2782 = vmatprep.subr.bf16.mxu0 %v3291_v30 }
 0xf7b   :  { %2784 = vmatpush1.bf16.msra.mxu0 %v3305_v34  ;;  %v3006_v18 = vpop.eup %3005 }
 0xf7c   :  { %2786 = vmatprep.subr.bf16.mxu0 %v3367_v60 }
 0xfcf   :  { %v1335_v62 = vpop.permute.xlu1 %1334 }
 0xfd0   :  { %v1337_v16 = vmul.f32 %v3006_v18, %v1335_v62 }
 0xfd2   :  { %1445 = vrot.lane.b32.xlu1 %v1337_v16, %s3119_s21 }
0x1041   :  { %v1619_v22 = vpop.f32.mrb[12].mxu0 }
0x1042   :  { %v1621_v23 = vpop.f32.mrb[13].mxu0  ;;  %v2847_v60 = vadd.f32 %v1619_v22, %v3360_v49 }
0x1043   :  { %v2848_v29 = vadd.f32 %v1621_v23, %v3350_v43 }
0x1044   :  { %v1446_v19 = vpop.permute.xlu1 %1445  ;;  %v2358_v27 = vmul.f32 -1.442695, %v2847_v60 }
0x1045   :  { %3007 = vtanh.f32 %v2848_v29  ;;  %v1448_v30 = vsel %vm281_vm1, %v1443_v11, %v1446_v19  ;;  %v2359_v3 = vmul.f32 -1.442695, %v2848_v29 }
0x1046   :  { %1514 = vmatmul.mubr.f32.vlgmr.msra.gmra.mrb[8].mxu1 %v1448_v30  ;;  %3009 = vpow2.f32 %v2358_v27 }
0x1047   :  { %2740 = vmatpush1.bf16.msra.mxu1 %v3369_v1  ;;  %1725 = vmatprep.mubr.f32.mxu1 %v3118_v0 }
0x1048   :  { %2742 = vmatprep.subr.bf16.mxu1 %v3371_v2 }
0x104b   :  { %2744 = vmatpush1.bf16.msra.mxu1 %v3375_v7 }
0x104c   :  { %2746 = vmatprep.subr.bf16.mxu1 %v3378_v8 }
0x104f   :  { %v3008_v34 = vpop.eup %3007  ;;  %2748 = vmatpush1.bf16.msra.mxu1 %v3381_v15 }
0x1050   :  { %1641 = vrot.lane.b32.xlu1 %v3008_v34, %s3119_s21  ;;  %2750 = vmatprep.subr.bf16.mxu1 %v3384_v17  ;;  %v3010_v28 = vpop.eup %3009 }
0x1051   :  { %v1632_v57 = vadd.f32 1.0, %v3010_v28 }
0x1053   :  { %2752 = vmatpush1.bf16.msra.mxu1 %v3387_v24  ;;  %3011 = vrcp.f32 %v1632_v57 }
0x1054   :  { %2754 = vmatprep.subr.bf16.mxu1 %v3390_v25 }
0x1057   :  { %2756 = vmatpush1.bf16.msra.mxu1 %v3393_v32 }
0x1058   :  { %2758 = vmatprep.subr.bf16.mxu1 %v3396_v33 }
0x105b   :  { %2760 = vmatpush1.bf16.msra.mxu1 %v3399_v39 }
0x105c   :  { %2762 = vmatprep.subr.bf16.mxu1 %v3402_v42 }
0x105d   :  { %v3012_v59 = vpop.eup %3011 }
0x105e   :  { %v1639_v48 = vmul.f32 %v3012_v59, %v3661_v40 }
0x105f   :  { %2764 = vmatpush1.bf16.msra.mxu1 %v3405_v51 }
0x1060   :  { %2766 = vmatprep.subr.bf16.mxu1 %v3408_v52 }
0x1063   :  { %2768 = vmatpush1.bf16.msra.mxu1 %v3411_v56 }
0x10c2   :  { %v1642_v31 = vpop.permute.xlu1 %1641 }
0x10c3   :  { %v1644_v36 = vmul.f32 %v3012_v59, %v1642_v31 }
0x10c5   :  { %1646 = vrot.lane.b32.xlu1 %v1644_v36, %s3119_s21 }
0x1119   :  { %v1515_v37 = vpop.f32.mrb[8].mxu1 }
0x111a   :  { %v1517_v38 = vpop.f32.mrb[9].mxu1  ;;  %v1516_v58 = vadd.f32 %v1515_v37, %v3463_v41 }
0x111b   :  { %v1518_v44 = vadd.f32 %v1517_v38, %v3455_v54 }
0x111c   :  { %v2355_v61 = vmul.f32 -1.442695, %v1516_v58 }
0x111d   :  { %3013 = vtanh.f32 %v1518_v44 }
0x1127   :  { %v3014_v45 = vpop.eup %3013 }
0x1128   :  { %1535 = vrot.lane.b32.xlu0 %v3014_v45, %s3119_s21 }
0x1137   :  { %v1647_v26 = vpop.permute.xlu1 %1646 }
0x1138   :  { %v3705_v47 = vadd.f32 %v1647_v26, %v1639_v48 }
0x113a   :  { %3015 = vtanh.f32 %v3705_v47 }
0x113b   :  { %3017 = vpow2.f32 %v2355_v61 }
0x1144   :  { %v3016_v53 = vpop.eup %3015 }
0x1145   :  { %1652 = vrot.lane.b32.xlu1 %v3016_v53, %s3119_s21  ;;  %v3018_v35 = vpop.eup %3017 }
0x1146   :  { %v1526_v63 = vadd.f32 1.0, %v3018_v35 }
0x1148   :  { %3019 = vrcp.f32 %v1526_v63 }
0x1149   :  { %3021 = vpow2.f32 %v2359_v3 }
0x1152   :  { %v3020_v4 = vpop.eup %3019 }
0x1153   :  { %v3022_v40 = vpop.eup %3021 }
0x1154   :  { %v1633_v13 = vadd.f32 1.0, %v3022_v40 }
0x1156   :  { %3023 = vrcp.f32 %v1633_v13 }
0x1160   :  { %v3024_v12 = vpop.eup %3023 }
0x119a   :  { %v1536_v6 = vpop.permute.xlu0 %1535 }
0x119b   :  { %v1538_v46 = vmul.f32 %v3020_v4, %v1536_v6 }
0x119d   :  { %1540 = vrot.lane.b32.xlu0 %v1538_v46, %s3119_s21 }
0x11b7   :  { %v1653_v20 = vpop.permute.xlu1 %1652 }
0x11b8   :  { %v1655_v55 = vmul.f32 %v3024_v12, %v1653_v20 }
0x11ba   :  { %2362 = vmatmul.mubr.msk.f32.vlgmr.msra.gmra.mrb[14].mxu0 %vm281_vm1, %v1655_v55 }
0x11bb   :  { %2788 = vmatpush1.bf16.msra.mxu0 %v3369_v1  ;;  %1937 = vmatprep.mubr.f32.mxu0 %v3118_v0  ;;  %v1533_v1 = vmul.f32 %v3020_v4, %v3666_v9 }
0x11bc   :  { %2790 = vmatprep.subr.bf16.mxu0 %v3371_v2 }
0x11bf   :  { %2792 = vmatpush1.bf16.msra.mxu0 %v3375_v7 }
0x11c0   :  { %2794 = vmatprep.subr.bf16.mxu0 %v3378_v8 }
0x11c3   :  { %2796 = vmatpush1.bf16.msra.mxu0 %v3381_v15  ;;  %v2356_v15 = vmul.f32 -1.442695, %v1518_v44 }
0x11c4   :  { %2798 = vmatprep.subr.bf16.mxu0 %v3384_v17 }
0x11c7   :  { %2800 = vmatpush1.bf16.msra.mxu0 %v3387_v24 }
0x11c8   :  { %2802 = vmatprep.subr.bf16.mxu0 %v3390_v25 }
0x11cb   :  { %2804 = vmatpush1.bf16.msra.mxu0 %v3393_v32 }
0x11cc   :  { %2806 = vmatprep.subr.bf16.mxu0 %v3396_v33 }
0x11cf   :  { %2808 = vmatpush1.bf16.msra.mxu0 %v3399_v39 }
0x11d0   :  { %2810 = vmatprep.subr.bf16.mxu0 %v3402_v42 }
0x11d3   :  { %2812 = vmatpush1.bf16.msra.mxu0 %v3405_v51 }
0x11d4   :  { %2814 = vmatprep.subr.bf16.mxu0 %v3408_v52 }
0x11d7   :  { %2816 = vmatpush1.bf16.msra.mxu0 %v3411_v56 }
0x120f   :  { %v1541_v2 = vpop.permute.xlu0 %1540 }
0x1210   :  { %v1543_v7 = vadd.f32 %v1541_v2, %v1533_v1 }
0x1212   :  { %3025 = vtanh.f32 %v1543_v7 }
0x1213   :  { %3027 = vpow2.f32 %v2356_v15 }
0x121c   :  { %v3026_v8 = vpop.eup %3025 }
0x121d   :  { %1546 = vrot.lane.b32.xlu0 %v3026_v8, %s3119_s21  ;;  %v3028_v17 = vpop.eup %3027 }
0x121e   :  { %v1527_v24 = vadd.f32 1.0, %v3028_v17 }
0x1220   :  { %3029 = vrcp.f32 %v1527_v24  ;;  %v1975_v24 = vld [vmem:[%s3837_s7 + $0x8] sm:$0xff] }
0x122a   :  { %v3030_v33 = vpop.eup %3029 }
0x128d   :  { %v1831_v25 = vpop.f32.mrb[14].mxu0 }
0x128e   :  { %v1833_v32 = vpop.f32.mrb[15].mxu0  ;;  %v2849_v56 = vadd.f32 %v1831_v25, %v3360_v49  ;;  %v3120_v25 = vmov 0.0|0.0  }
0x128f   :  { %v2850_v39 = vadd.f32 %v1833_v32, %v3350_v43  ;;  %v1547_v42 = vpop.permute.xlu0 %1546  ;;  %2817 = vmatprep.subr.bf16.mxu1 %v3120_v25  ;;  %2829 = vmatprep.subr.bf16.mxu0 %v3120_v25 }
0x1290   :  { %v1549_v51 = vmul.f32 %v3030_v33, %v1547_v42  ;;  %v2363_v9 = vmul.f32 -1.442695, %v2849_v56  ;;  %v1977_v33 = vld [vmem:[%s3837_s7 + $0x18] sm:$0xff]  ;;  %v1978_v42 = vld [vmem:[%s3837_s7 + $0x20] sm:$0xff]  ;;  %v1980_v56 = vld [vmem:[%s3837_s7 + $0x30] sm:$0xff] }
0x1291   :  { %3031 = vtanh.f32 %v2850_v39  ;;  %v2364_v58 = vmul.f32 -1.442695, %v2850_v39 }
0x1292   :  { %1657 = vrot.lane.b32.xlu0 %v1549_v51, %s3119_s21  ;;  %3033 = vpow2.f32 %v2363_v9  ;;  %v1979_v51 = vld [vmem:[%s3837_s7 + $0x28] sm:$0xff]  ;;  %v1981_v9 = vld [vmem:[%s3837_s7 + $0x38] sm:$0xff] }
0x129b   :  { %v3032_v52 = vpop.eup %3031 }
0x129c   :  { %1853 = vrot.lane.b32.xlu0 %v3032_v52, %s3119_s21  ;;  %v3034_v5 = vpop.eup %3033  ;;  %v2824_v52 = vpack.c.bf16 %v1979_v51, %v1978_v42 }
0x129d   :  { %v1844_v10 = vadd.f32 1.0, %v3034_v5  ;;  %v2827_v5 = vpack.c.bf16 %v1981_v9, %v1980_v56 }
0x129f   :  { %3035 = vrcp.f32 %v1844_v10 }
0x12a9   :  { %v3036_v43 = vpop.eup %3035 }
0x12aa   :  { %v1851_v18 = vmul.f32 %v3036_v43, %v3705_v47 }
0x1304   :  { %v1658_v11 = vpop.permute.xlu0 %1657 }
0x1305   :  { %v1660_v50 = vsel %vm281_vm1, %v1655_v55, %v1658_v11 }
0x1306   :  { %1726 = vmatmul.mubr.f32.vlgmr.msra.gmra.mrb[10].mxu1 %v1660_v50 }
0x1307   :  { %2407 = vmatprep.mubr.msk.f32.mxu1 %vm3121_vm2, %v3118_v0 }
0x130e   :  { %v1854_v21 = vpop.permute.xlu0 %1853 }
0x130f   :  { %v1856_v14 = vmul.f32 %v3036_v43, %v1854_v21 }
0x1311   :  { %1858 = vrot.lane.b32.xlu0 %v1856_v14, %s3119_s21 }
0x1383   :  { %v1859_v62 = vpop.permute.xlu0 %1858 }
0x1384   :  { %v1861_v16 = vadd.f32 %v1859_v62, %v1851_v18 }
0x1386   :  { %3037 = vtanh.f32 %v1861_v16 }
0x1390   :  { %v3038_v49 = vpop.eup %3037 }
0x1391   :  { %1864 = vrot.lane.b32.xlu0 %v3038_v49, %s3119_s21 }
0x13d9   :  { %v1727_v22 = vpop.f32.mrb[10].mxu1 }
0x13da   :  { %v1729_v23 = vpop.f32.mrb[11].mxu1  ;;  %v1728_v30 = vadd.f32 %v1727_v22, %v3463_v41  ;;  %v2063_v22 = vld [vmem:[%s3839_s9] sm:$0xff] }
0x13db   :  { %v1730_v29 = vadd.f32 %v1729_v23, %v3455_v54  ;;  %v2062_v23 = vld [vmem:[%s3831_s1] sm:$0xff] }
0x13dc   :  { %v2360_v34 = vmul.f32 -1.442695, %v1728_v30 }
0x13dd   :  { %3039 = vtanh.f32 %v1730_v29  ;;  %v2361_v44 = vmul.f32 -1.442695, %v1730_v29  ;;  %v2145_v29 = vld [vmem:[%s3841_s11] sm:$0xff] }
0x13de   :  { %3041 = vpow2.f32 %v2360_v34  ;;  %v2147_v34 = vld [vmem:[%s3841_s11 + $0x10] sm:$0xff] }
0x13e7   :  { %v3040_v19 = vpop.eup %3039 }
0x13e8   :  { %1747 = vrot.lane.b32.xlu1 %v3040_v19, %s3119_s21  ;;  %v3042_v60 = vpop.eup %3041  ;;  %v2146_v19 = vld [vmem:[%s3841_s11 + $0x8] sm:$0xff] }
0x13e9   :  { %v1738_v27 = vadd.f32 1.0, %v3042_v60  ;;  %v2833_v30 = vpack.c.bf16 %v2146_v19, %v2145_v29  ;;  %v2148_v60 = vld [vmem:[%s3841_s11 + $0x18] sm:$0xff] }
0x13eb   :  { %3043 = vrcp.f32 %v1738_v27  ;;  %v2830_v27 = vpack.c.bf16 %v2148_v60, %v2147_v34 }
0x13f5   :  { %v3044_v28 = vpop.eup %3043 }
0x13f6   :  { %v1745_v31 = vmul.f32 %v3044_v28, %v1543_v7 }
0x1403   :  { %v1865_v63 = vpop.permute.xlu0 %1864 }
0x145a   :  { %v1748_v57 = vpop.permute.xlu1 %1747 }
0x145b   :  { %v1750_v59 = vmul.f32 %v3044_v28, %v1748_v57 }
0x145d   :  { %1752 = vrot.lane.b32.xlu1 %v1750_v59, %s3119_s21 }
0x14cf   :  { %v1753_v36 = vpop.permute.xlu1 %1752 }
0x14d0   :  { %v3742_v37 = vadd.f32 %v1753_v36, %v1745_v31  ;;  %v2369_v31 = vld [vmem:[%s3840_s10] ss:$0 sm:$0xff] }
0x14d2   :  { %3045 = vtanh.f32 %v3742_v37 }
0x14d3   :  { %3047 = vpow2.f32 %v2361_v44 }
0x14dc   :  { %v3046_v38 = vpop.eup %3045 }
0x14dd   :  { %1758 = vrot.lane.b32.xlu1 %v3046_v38, %s3119_s21  ;;  %v3048_v45 = vpop.eup %3047 }
0x14de   :  { %v1739_v48 = vadd.f32 1.0, %v3048_v45 }
0x14e0   :  { %3049 = vrcp.f32 %v1739_v48 }
0x14e1   :  { %3051 = vpow2.f32 %v2364_v58 }
0x14ea   :  { %v3050_v26 = vpop.eup %3049 }
0x14eb   :  { %v3052_v61 = vpop.eup %3051 }
0x14ec   :  { %v1845_v35 = vadd.f32 1.0, %v3052_v61 }
0x14ee   :  { %3053 = vrcp.f32 %v1845_v35 }
0x14f8   :  { %v3054_v3 = vpop.eup %3053 }
0x14f9   :  { %v1867_v4 = vmul.f32 %v3054_v3, %v1865_v63 }
0x154f   :  { %v1759_v47 = vpop.permute.xlu1 %1758 }
0x1550   :  { %v1761_v53 = vmul.f32 %v3050_v26, %v1759_v47  ;;  %v2373_v26 = vld [vmem:[%s3842_s12] ss:$0 sm:$0xff] }
0x1552   :  { %1869 = vrot.lane.b32.xlu1 %v1761_v53, %s3119_s21 }
0x15c4   :  { %v1870_v6 = vpop.permute.xlu1 %1869 }
0x15c5   :  { %v1872_v46 = vsel %vm281_vm1, %v1867_v4, %v1870_v6 }
0x15c6   :  { %1938 = vmatmul.mubr.f32.vlgmr.msra.gmra.mrb[18].mxu0 %v1872_v46 }
0x15c7   :  { %2419 = vmatprep.mubr.msk.f32.mxu0 %vm3121_vm2, %v3118_v0  ;;  %2831 = vmatpush3.bf16.msra.mxu0 %v2830_v27 }
0x1699   :  { %v1939_v40 = vpop.f32.mrb[18].mxu0 }
0x169a   :  { %v1941_v13 = vpop.f32.mrb[19].mxu0  ;;  %v1940_v55 = vadd.f32 %v1939_v40, %v3463_v41  ;;  %v1976_v41 = vld [vmem:[%s3837_s7 + $0x10] sm:$0xff] }
0x169b   :  { %v1942_v12 = vadd.f32 %v1941_v13, %v3455_v54  ;;  %v1974_v54 = vld [vmem:[%s3837_s7] sm:$0xff]  ;;  %v2821_v39 = vpack.c.bf16 %v1977_v33, %v1976_v41 }
0x169c   :  { %v2365_v1 = vmul.f32 -1.442695, %v1940_v55  ;;  %v2818_v32 = vpack.c.bf16 %v1975_v24, %v1974_v54 }
0x169d   :  { %3055 = vtanh.f32 %v1942_v12  ;;  %v2366_v21 = vmul.f32 -1.442695, %v1942_v12 }
0x169e   :  { %3057 = vpow2.f32 %v2365_v1  ;;  %2819 = vmatpush3.bf16.msra.mxu1 %v2818_v32 }
0x169f   :  { %2820 = vmatprep.subr.bf16.mxu1 %v3120_v25 }
0x16a2   :  { %2822 = vmatpush3.bf16.msra.mxu1 %v2821_v39 }
0x16a3   :  { %2823 = vmatprep.subr.bf16.mxu1 %v3120_v25 }
0x16a6   :  { %2825 = vmatpush3.bf16.msra.mxu1 %v2824_v52 }
0x16a7   :  { %v3056_v20 = vpop.eup %3055  ;;  %2826 = vmatprep.subr.bf16.mxu1 %v3120_v25 }
0x16a8   :  { %1959 = vrot.lane.b32.xlu0 %v3056_v20, %s3119_s21  ;;  %v3058_v2 = vpop.eup %3057 }
0x16a9   :  { %v1950_v7 = vadd.f32 1.0, %v3058_v2 }
0x16aa   :  { %2828 = vmatpush3.bf16.msra.mxu1 %v2827_v5 }
0x16ab   :  { %3059 = vrcp.f32 %v1950_v7  ;;  %2410 = vmatprep.subr.mxu1 %v3118_v0 }
0x16b5   :  { %v3060_v8 = vpop.eup %3059 }
0x16b6   :  { %v1957_v10 = vmul.f32 %v3060_v8, %v3742_v37 }
0x171a   :  { %v1960_v15 = vpop.permute.xlu0 %1959 }
0x171b   :  { %v1962_v17 = vmul.f32 %v3060_v8, %v1960_v15 }
0x171d   :  { %1964 = vrot.lane.b32.xlu1 %v1962_v17, %s3119_s21 }
0x178f   :  { %v1965_v11 = vpop.permute.xlu1 %1964 }
0x1790   :  { %v1967_v50 = vadd.f32 %v1965_v11, %v1957_v10 }
0x1792   :  { %3061 = vtanh.f32 %v1967_v50 }
0x1793   :  { %3063 = vpow2.f32 %v2366_v21 }
0x179c   :  { %v3062_v43 = vpop.eup %3061 }
0x179d   :  { %1970 = vrot.lane.b32.xlu0 %v3062_v43, %s3119_s21  ;;  %v3064_v14 = vpop.eup %3063 }
0x179e   :  { %v1951_v18 = vadd.f32 1.0, %v3064_v14 }
0x17a0   :  { %3065 = vrcp.f32 %v1951_v18 }
0x17aa   :  { %v3066_v62 = vpop.eup %3065 }
0x180f   :  { %v1971_v16 = vpop.permute.xlu0 %1970 }
0x1810   :  { %v1973_v49 = vmul.f32 %v3066_v62, %v1971_v16 }
0x1812   :  { %2408 = vmatmul.mubr.msk.f32.vlgmr.msra.gmra.mrb[12].mxu1 %vm281_vm1, %v1973_v49 }
0x1813   :  { %2411 = vmatpush3.msra.mxu1 %v2063_v22  ;;  %2412 = vmatprep.mubr.msk.f32.mxu1 %vm3121_vm2, %v3118_v0 }
0x1814   :  { %2832 = vmatprep.subr.bf16.mxu1 %v3120_v25 }
0x1816   :  { %2413 = vmatmul.mubr.msk.f32.vlgmr.msra.gmra.mrb[14].mxu1 %vm2071_vm3, %v2062_v23 }
0x1817   :  { %2426 = vmatprep.mubr.msk.f32.mxu1 %vm3121_vm2, %v3118_v0  ;;  %2834 = vmatpush3.bf16.msra.mxu1 %v2833_v30  ;;  %v2367_v0 = vld [vmem:[%s3838_s8] ss:$0 sm:$0xff]  ;;  %s3122_s8 = smov [#allocation5]  }
0x1818   :  { %s2310_s26 = sshll.u32 %s3122_s8, 4  ;;  %s2311_s26 = int_to_ptr.vmem [resolvable:$true] %s2310_s26 }
0x1819   :  { %s3089_s10 = scalar_lea.vmem %s2311_s26, 128  ;;  %p3094_p9 = scmp.lt.s32.totalorder %s2311_s26, %s2311_s26 }
0x181a   :  { %p3090_p8 = scmp.ne.s32.totalorder %s2311_s26, %s3089_s10  ;;  %p3095_p10 = scmp.lt.s32.totalorder %s3089_s10, %s3089_s10 }
0x181c   :  { %p3096_p11 = por %p3095_p10, %p3094_p9 }
0x181e   :  { %p3097_p12 = pnand %p3096_p11, %p3090_p8 }
0x18e5   :  { %v2058_v28 = vpop.f32.mrb[12].mxu1 }
0x18e6   :  { %v2059_v57 = vadd.f32 %v2367_v0, %v2058_v28  ;;  %v2409_v59 = vpop.f32.mrb[13].mxu1 }
0x18e8   :  { %2427 = vmatmul.mubr.msk.f32.vlgmr.msra.gmra.mrb[16].mxu1 %vm83_vm0, %v2059_v57 }
0x18e9   :  { %v2141_v36 = vpop.f32.mrb[14].mxu1 }
0x18ea   :  { %v2142_v37 = vadd.f32 %v2369_v31, %v2141_v36  ;;  %v2414_v38 = vpop.f32.mrb[15].mxu1 }
0x18ec   :  { %2420 = vmatmul.mubr.msk.f32.vlgmr.msra.gmra.mrb[20].mxu0 %vm83_vm0, %v2142_v37 }
0x19bb   :  { %v2291_v44 = vpop.f32.mrb[16].mxu1 }
0x19bc   :  { %v2428_v45 = vpop.f32.mrb[17].mxu1 }
0x19bf   :  { %v2218_v48 = vpop.f32.mrb[20].mxu0 }
0x19c0   :  { %v2292_v47 = vadd.f32 %v2291_v44, %v2218_v48  ;;  %v2421_v53 = vpop.f32.mrb[21].mxu0 }
0x19c2   :  { %v2302_v58 = vadd.f32 %v2373_v26, %v2292_v47 }
0x19c4   :  { %2303 = vst.msk [vmem:[#allocation5] sm:$0xff] %vm83_vm0, %v2302_v58 }
0x19c5   :  { %3100 = shalt.err (!%p3097_p12)
}
0x19c6   :  { %s3101_s14 = scalar_lea.hbm %s3843_s13, 128 }
0x19c7   :  { %p3102_p13 = scmp.ne.s32.totalorder %s3843_s13, %s3101_s14  ;;  %p3105_p0 = scmp.lt.u32.totalorder %s3101_s14, %s3843_s13 }
0x19c9   :  { %p3107_p1 = pnand %p3105_p0, %p3102_p13 }
0x19cb   :  { %3110 = shalt.err (!%p3107_p1)
}
0x19cc   :  { %2313 = dma.vmem_to_hbm [thread:$0]  %s2311_s26, 128, %s3843_s13, [#allocation4]  }
0x19cd   :  { %3113 = dma.done.wait [#allocation4], 128  }
0x19ce   :  { %3114 = vsyncadd [#allocation4], 4294967168 }
0x19cf   :  { %2317 = vsyncpa [#allocation3], 1 }
0x19d0   :  { %2318 = vsyncpa [#allocation4], 1 }

</bundles_post_ra>
